<compile_context>
chip_gen: v6e
topology: v6e:2x2x1
jax: 0.10.0
libtpu: 0.0.40
codegen_flags: <defaults>
</compile_context>

<pallas_src>
import functools
import math

import jax
import jax.numpy as jnp
from jax.experimental import pallas as pl
from jax.experimental.pallas import tpu as pltpu


def _layernorm(x, g, b, eps=1e-5):
    # PyTorch nn.LayerNorm: biased variance over last dim (f32).
    mu = jnp.mean(x, axis=-1, keepdims=True)
    var = jnp.mean((x - mu) * (x - mu), axis=-1, keepdims=True)
    return (x - mu) * jax.lax.rsqrt(var + eps) * g + b


def _gelu_exact(x):
    # PyTorch nn.GELU default: exact erf formulation (f32).
    return 0.5 * x * (1.0 + jax.lax.erf(x * (1.0 / math.sqrt(2.0))))


def _softmax_lastdim(s):
    m = jnp.max(s, axis=-1, keepdims=True)
    e = jnp.exp(s - m)
    return e * pl.reciprocal(jnp.sum(e, axis=-1, keepdims=True), approx=True)


def block_kernel(x_ref, g1_ref, b1_ref, wqkv_ref, wproj_ref, bproj_ref,
                 g2_ref, b2_ref, w1_ref, bm1_ref, w2_ref, bm2_ref,
                 o_ref, *, num_heads):
    Bb, N, C = x_ref.shape
    Dh = C // num_heads

    # Flatten the Bb batch rows so the big K=C / K=H matmuls see M = Bb*N rows.
    x = x_ref[...].astype(jnp.float32).reshape(Bb * N, C)

    # ---- norm1 ----
    ln1 = _layernorm(x, g1_ref[...], b1_ref[...])                     # f32

    # ---- attention ----
    # q-columns of wqkv are pre-scaled by head_dim**-0.5 in the wrapper.
    qkv = jnp.dot(ln1.astype(jnp.bfloat16), wqkv_ref[...],
                  preferred_element_type=jnp.float32)                 # (Bb*N, 3C)
    qkv = qkv.astype(jnp.bfloat16)
    wproj = wproj_ref[...]                                            # (C, C) bf16

    y_rows = []
    for b in range(Bb):                         # batch rows in this tile
        r0 = b * N
        yb = jnp.zeros((N, C), jnp.float32)     # projected attention output
        for h in range(num_heads):              # accumulate proj per head
            c0 = h * Dh
            qh = qkv[r0:r0 + N, c0:c0 + Dh]                 # (N, Dh) bf16
            kh = qkv[r0:r0 + N, C + c0:C + c0 + Dh]
            vh = qkv[r0:r0 + N, 2 * C + c0:2 * C + c0 + Dh]
            # scores: contract on last dims (no explicit transpose)
            s = jax.lax.dot_general(qh, kh, (((1,), (1,)), ((), ())),
                                    preferred_element_type=jnp.float32)  # (N, N)
            a = _softmax_lastdim(s).astype(jnp.bfloat16)
            oh = jnp.dot(a, vh, preferred_element_type=jnp.float32)      # (N, Dh)
            # fold head-concat into the output projection: accumulate directly
            yb = yb + jnp.dot(oh.astype(jnp.bfloat16), wproj[c0:c0 + Dh, :],
                              preferred_element_type=jnp.float32)
        y_rows.append(yb)
    y = (jnp.concatenate(y_rows, axis=0) if Bb > 1 else y_rows[0]) + bproj_ref[...]

    # ---- residual 1 (f32) ----
    x1 = x + y

    # ---- norm2 + MLP ----
    ln2 = _layernorm(x1, g2_ref[...], b2_ref[...])
    h1 = jnp.dot(ln2.astype(jnp.bfloat16), w1_ref[...],
                 preferred_element_type=jnp.float32) + bm1_ref[...]
    h1 = _gelu_exact(h1)
    h2 = jnp.dot(h1.astype(jnp.bfloat16), w2_ref[...],
                 preferred_element_type=jnp.float32) + bm2_ref[...]

    # ---- residual 2 ----
    o_ref[...] = (x1 + h2).reshape(Bb, N, C).astype(o_ref.dtype)


def _pick_block_b(B, max_bb=8, min_steps=2):
    """Largest divisor of B (<= max_bb) keeping >= min_steps grid steps so both
    v7x TensorCores get work; falls back to 1."""
    best = 1
    for bb in range(1, min(B, max_bb) + 1):
        if B % bb == 0 and (B // bb) >= min(min_steps, B):
            best = bb
    return best


def vit_block_pallas(x, params, num_heads, block_b=None):
    B, N, C = x.shape
    H = params["w1"].shape[1]          # mlp hidden dim
    Dh = C // num_heads
    scale = Dh ** (-0.5)

    if block_b is None:
        block_b = _pick_block_b(B)
    assert B % block_b == 0
    grid_b = B // block_b

    # Fold the attention scale into the q-columns of wqkv; cast weights to bf16.
    col_scale = jnp.concatenate([jnp.full((C,), scale, jnp.float32),
                                 jnp.ones((2 * C,), jnp.float32)])[None, :]
    wqkv = (params["wqkv"].astype(jnp.float32) * col_scale).astype(jnp.bfloat16)
    wproj = params["wproj"].astype(jnp.bfloat16)
    w1 = params["w1"].astype(jnp.bfloat16)
    w2 = params["w2"].astype(jnp.bfloat16)

    const = lambda shape: pl.BlockSpec(shape, lambda b: tuple(0 for _ in shape))

    return pl.pallas_call(
        functools.partial(block_kernel, num_heads=num_heads),
        out_shape=jax.ShapeDtypeStruct((B, N, C), x.dtype),
        grid_spec=pltpu.PrefetchScalarGridSpec(
            num_scalar_prefetch=0,
            grid=(grid_b,),
            in_specs=[
                pl.BlockSpec((block_b, N, C), lambda b: (b, 0, 0)),   # x
                const((1, C)),            # norm1 gamma  (f32)
                const((1, C)),            # norm1 beta   (f32)
                const((C, 3 * C)),        # qkv weight   (bf16, q-cols pre-scaled)
                const((C, C)),            # proj weight  (bf16)
                const((1, C)),            # proj bias    (f32)
                const((1, C)),            # norm2 gamma  (f32)
                const((1, C)),            # norm2 beta   (f32)
                const((C, H)),            # fc1 weight   (bf16)
                const((1, H)),            # fc1 bias     (f32)
                const((H, C)),            # fc2 weight   (bf16)
                const((1, C)),            # fc2 bias     (f32)
            ],
            out_specs=pl.BlockSpec((block_b, N, C), lambda b: (b, 0, 0)),
        ),
        compiler_params=pltpu.CompilerParams(
            dimension_semantics=("parallel",),
            vmem_limit_bytes=64 * 1024 * 1024),
    )(x,
      params["g1"], params["b1"],
      wqkv, wproj, params["bproj"],
      params["g2"], params["b2"],
      w1, params["bm1"], w2, params["bm2"])


def vit_block_ref(x, params, num_heads):
    """Pure-JAX f32 reference mirroring the PyTorch Block.forward (eval mode)."""
    B, N, C = x.shape
    Dh = C // num_heads
    scale = Dh ** (-0.5)

    def ln(z, g, b):
        mu = jnp.mean(z, -1, keepdims=True)
        var = jnp.mean((z - mu) ** 2, -1, keepdims=True)
        return (z - mu) / jnp.sqrt(var + 1e-5) * g[0] + b[0]

    h = ln(x, params["g1"], params["b1"])
    qkv = h @ params["wqkv"]                                  # (B, N, 3C)
    qkv = qkv.reshape(B, N, 3, num_heads, Dh).transpose(2, 0, 3, 1, 4)
    q, k, v = qkv[0], qkv[1], qkv[2]                          # (B, H, N, Dh)
    attn = jax.nn.softmax((q @ jnp.swapaxes(k, -2, -1)) * scale, axis=-1)
    y = (attn @ v).transpose(0, 2, 1, 3).reshape(B, N, C)
    y = y @ params["wproj"] + params["bproj"][0]
    x = x + y
    h = ln(x, params["g2"], params["b2"])
    h = jax.nn.gelu(h @ params["w1"] + params["bm1"][0], approximate=False)
    h = h @ params["w2"] + params["bm2"][0]
    return x + h


if __name__ == "__main__":
    # Small but lane-friendly shapes: C multiple of 128, N multiple of 8.
    B, N, C = 2, 16, 128
    num_heads = 4
    mlp_hidden = int(C * 4.0)

    key = jax.random.PRNGKey(0)
    ks = jax.random.split(key, 10)

    params = {
        "g1":    jnp.ones((1, C), jnp.float32) + 0.01 * jax.random.normal(ks[0], (1, C)),
        "b1":    0.01 * jax.random.normal(ks[1], (1, C)),
        "wqkv":  0.05 * jax.random.normal(ks[2], (C, 3 * C)),          # = qkv.weight.T
        "wproj": 0.05 * jax.random.normal(ks[3], (C, C)),              # = proj.weight.T
        "bproj": 0.01 * jax.random.normal(ks[4], (1, C)),
        "g2":    jnp.ones((1, C), jnp.float32) + 0.01 * jax.random.normal(ks[5], (1, C)),
        "b2":    0.01 * jax.random.normal(ks[6], (1, C)),
        "w1":    0.05 * jax.random.normal(ks[7], (C, mlp_hidden)),     # = fc1.weight.T
        "bm1":   0.01 * jax.random.normal(ks[8], (1, mlp_hidden)),
        "w2":    0.05 * jax.random.normal(ks[9], (mlp_hidden, C)),     # = fc2.weight.T
        "bm2":   jnp.zeros((1, C), jnp.float32),
    }
    params = {k: v.astype(jnp.float32) for k, v in params.items()}

    x = jax.random.normal(jax.random.PRNGKey(0), (B, N, C), jnp.float32)

    out = vit_block_pallas(x, params, num_heads)
    out = jax.block_until_ready(out)

    ref = vit_block_ref(x, params, num_heads)
    assert out.shape == (B, N, C)
    # Tolerance accounts for intentional bf16 matmul operands (f32 accumulation).
    assert jnp.allclose(out, ref, rtol=2e-2, atol=2e-2), "mismatch vs reference"

    print("KERNEL_OK")
</pallas_src>

<mosaic_0001>
module attributes {stable_mosaic.version = 11 : i64} {
  func.func @block_kernel(%arg0: i32, %arg1: memref<1x16x128xf32, #tpu.memory_space<vmem>>, %arg2: memref<1x128xf32, #tpu.memory_space<vmem>>, %arg3: memref<1x128xf32, #tpu.memory_space<vmem>>, %arg4: memref<128x384xbf16, #tpu.memory_space<vmem>>, %arg5: memref<128x128xbf16, #tpu.memory_space<vmem>>, %arg6: memref<1x128xf32, #tpu.memory_space<vmem>>, %arg7: memref<1x128xf32, #tpu.memory_space<vmem>>, %arg8: memref<1x128xf32, #tpu.memory_space<vmem>>, %arg9: memref<128x512xbf16, #tpu.memory_space<vmem>>, %arg10: memref<1x512xf32, #tpu.memory_space<vmem>>, %arg11: memref<512x128xbf16, #tpu.memory_space<vmem>>, %arg12: memref<1x128xf32, #tpu.memory_space<vmem>>, %arg13: memref<1x16x128xf32, #tpu.memory_space<vmem>>) attributes {dimension_semantics = [#tpu.dimension_semantics<parallel>], iteration_bounds = array<i64: 2>, scalar_prefetch = 0 : i64, scratch_operands = 0 : i64, tpu.core_type = #tpu.core_type<tc>, window_params = [{transform_indices = @transform_0, window_bounds = array<i64: 1, 16, 128>}, {pipeline_mode = #tpu.pipeline_mode<synchronous>, transform_indices = @transform_1, window_bounds = array<i64: 1, 128>}, {pipeline_mode = #tpu.pipeline_mode<synchronous>, transform_indices = @transform_2, window_bounds = array<i64: 1, 128>}, {pipeline_mode = #tpu.pipeline_mode<synchronous>, transform_indices = @transform_3, window_bounds = array<i64: 128, 384>}, {pipeline_mode = #tpu.pipeline_mode<synchronous>, transform_indices = @transform_4, window_bounds = array<i64: 128, 128>}, {pipeline_mode = #tpu.pipeline_mode<synchronous>, transform_indices = @transform_5, window_bounds = array<i64: 1, 128>}, {pipeline_mode = #tpu.pipeline_mode<synchronous>, transform_indices = @transform_6, window_bounds = array<i64: 1, 128>}, {pipeline_mode = #tpu.pipeline_mode<synchronous>, transform_indices = @transform_7, window_bounds = array<i64: 1, 128>}, {pipeline_mode = #tpu.pipeline_mode<synchronous>, transform_indices = @transform_8, window_bounds = array<i64: 128, 512>}, {pipeline_mode = #tpu.pipeline_mode<synchronous>, transform_indices = @transform_9, window_bounds = array<i64: 1, 512>}, {pipeline_mode = #tpu.pipeline_mode<synchronous>, transform_indices = @transform_10, window_bounds = array<i64: 512, 128>}, {pipeline_mode = #tpu.pipeline_mode<synchronous>, transform_indices = @transform_11, window_bounds = array<i64: 1, 128>}, {transform_indices = @transform_12, window_bounds = array<i64: 1, 16, 128>}]} {
    %c0 = arith.constant 0 : index
    %c0_0 = arith.constant 0 : index
    %c0_1 = arith.constant 0 : index
    %0 = vector.load %arg1[%c0, %c0_0, %c0_1] : memref<1x16x128xf32, #tpu.memory_space<vmem>>, vector<1x16x128xf32>
    %1 = vector.shape_cast %0 : vector<1x16x128xf32> to vector<16x128xf32>
    %c0_2 = arith.constant 0 : index
    %c0_3 = arith.constant 0 : index
    %2 = vector.load %arg2[%c0_2, %c0_3] : memref<1x128xf32, #tpu.memory_space<vmem>>, vector<1x128xf32>
    %c0_4 = arith.constant 0 : index
    %c0_5 = arith.constant 0 : index
    %3 = vector.load %arg3[%c0_4, %c0_5] : memref<1x128xf32, #tpu.memory_space<vmem>>, vector<1x128xf32>
    %cst = arith.constant dense<0.000000e+00> : vector<16xf32>
    %4 = vector.multi_reduction <add>, %1, %cst [1] : vector<16x128xf32> to vector<16xf32>
    %5 = vector.shape_cast %4 : vector<16xf32> to vector<16x1xf32>
    %cst_6 = arith.constant 1.280000e+02 : f32
    %6 = vector.broadcast %cst_6 : f32 to vector<16x1xf32>
    %7 = arith.divf %5, %6 : vector<16x1xf32>
    %8 = vector.broadcast %7 : vector<16x1xf32> to vector<16x128xf32>
    %9 = arith.subf %1, %8 : vector<16x128xf32>
    %10 = vector.broadcast %7 : vector<16x1xf32> to vector<16x128xf32>
    %11 = arith.subf %1, %10 : vector<16x128xf32>
    %12 = arith.mulf %9, %11 : vector<16x128xf32>
    %cst_7 = arith.constant dense<0.000000e+00> : vector<16xf32>
    %13 = vector.multi_reduction <add>, %12, %cst_7 [1] : vector<16x128xf32> to vector<16xf32>
    %14 = vector.shape_cast %13 : vector<16xf32> to vector<16x1xf32>
    %cst_8 = arith.constant 1.280000e+02 : f32
    %15 = vector.broadcast %cst_8 : f32 to vector<16x1xf32>
    %16 = arith.divf %14, %15 : vector<16x1xf32>
    %17 = vector.broadcast %7 : vector<16x1xf32> to vector<16x128xf32>
    %18 = arith.subf %1, %17 : vector<16x128xf32>
    %cst_9 = arith.constant 9.99999974E-6 : f32
    %19 = vector.broadcast %cst_9 : f32 to vector<16x1xf32>
    %20 = arith.addf %16, %19 : vector<16x1xf32>
    %21 = math.rsqrt %20 : vector<16x1xf32>
    %22 = vector.broadcast %21 : vector<16x1xf32> to vector<16x128xf32>
    %23 = arith.mulf %18, %22 : vector<16x128xf32>
    %24 = vector.broadcast %2 : vector<1x128xf32> to vector<16x128xf32>
    %25 = arith.mulf %23, %24 : vector<16x128xf32>
    %26 = vector.broadcast %3 : vector<1x128xf32> to vector<16x128xf32>
    %27 = arith.addf %25, %26 : vector<16x128xf32>
    %28 = arith.truncf %27 : vector<16x128xf32> to vector<16x128xbf16>
    %c0_10 = arith.constant 0 : index
    %c0_11 = arith.constant 0 : index
    %29 = vector.load %arg4[%c0_10, %c0_11] : memref<128x384xbf16, #tpu.memory_space<vmem>>, vector<128x384xbf16>
    %cst_12 = arith.constant dense<0.000000e+00> : vector<16x384xf32>
    %30 = tpu.matmul %28, %29, %cst_12 {dimension_numbers = #tpu.dot_dimension_numbers<[1], [0], [0], [1], [0, 0, 1, 1], [], []>} : vector<16x128xbf16>, vector<128x384xbf16>, vector<16x384xf32> -> vector<16x384xf32>
    %31 = arith.truncf %30 : vector<16x384xf32> to vector<16x384xbf16>
    %c0_13 = arith.constant 0 : index
    %c0_14 = arith.constant 0 : index
    %32 = vector.load %arg5[%c0_13, %c0_14] : memref<128x128xbf16, #tpu.memory_space<vmem>>, vector<128x128xbf16>
    %cst_15 = arith.constant 0.000000e+00 : f32
    %33 = vector.broadcast %cst_15 : f32 to vector<16x128xf32>
    %34 = vector.extract_strided_slice %31 {offsets = [0, 0], sizes = [16, 32], strides = [1, 1]} : vector<16x384xbf16> to vector<16x32xbf16>
    %35 = vector.extract_strided_slice %31 {offsets = [0, 128], sizes = [16, 32], strides = [1, 1]} : vector<16x384xbf16> to vector<16x32xbf16>
    %36 = vector.extract_strided_slice %31 {offsets = [0, 256], sizes = [16, 32], strides = [1, 1]} : vector<16x384xbf16> to vector<16x32xbf16>
    %cst_16 = arith.constant dense<0.000000e+00> : vector<16x16xf32>
    %37 = tpu.matmul %34, %35, %cst_16 {dimension_numbers = #tpu.dot_dimension_numbers<[1], [1], [0], [0], [0, 0, 1, 0], [], []>} : vector<16x32xbf16>, vector<16x32xbf16>, vector<16x16xf32> -> vector<16x16xf32>
    %cst_17 = arith.constant dense<0xFF800000> : vector<16xf32>
    %38 = vector.multi_reduction <maximumf>, %37, %cst_17 [1] : vector<16x16xf32> to vector<16xf32>
    %39 = vector.shape_cast %38 : vector<16xf32> to vector<16x1xf32>
    %40 = vector.broadcast %39 : vector<16x1xf32> to vector<16x16xf32>
    %41 = arith.subf %37, %40 : vector<16x16xf32>
    %42 = math.exp %41 : vector<16x16xf32>
    %cst_18 = arith.constant dense<0.000000e+00> : vector<16xf32>
    %43 = vector.multi_reduction <add>, %42, %cst_18 [1] : vector<16x16xf32> to vector<16xf32>
    %44 = vector.shape_cast %43 : vector<16xf32> to vector<16x1xf32>
    %45 = tpu.reciprocal %44 {approx = true} : vector<16x1xf32> -> vector<16x1xf32>
    %46 = vector.broadcast %45 : vector<16x1xf32> to vector<16x16xf32>
    %47 = arith.mulf %42, %46 : vector<16x16xf32>
    %48 = arith.truncf %47 : vector<16x16xf32> to vector<16x16xbf16>
    %cst_19 = arith.constant dense<0.000000e+00> : vector<16x32xf32>
    %49 = tpu.matmul %48, %36, %cst_19 {dimension_numbers = #tpu.dot_dimension_numbers<[1], [0], [0], [1], [0, 0, 1, 1], [], []>} : vector<16x16xbf16>, vector<16x32xbf16>, vector<16x32xf32> -> vector<16x32xf32>
    %50 = arith.truncf %49 : vector<16x32xf32> to vector<16x32xbf16>
    %51 = vector.extract_strided_slice %32 {offsets = [0, 0], sizes = [32, 128], strides = [1, 1]} : vector<128x128xbf16> to vector<32x128xbf16>
    %cst_20 = arith.constant dense<0.000000e+00> : vector<16x128xf32>
    %52 = tpu.matmul %50, %51, %cst_20 {dimension_numbers = #tpu.dot_dimension_numbers<[1], [0], [0], [1], [0, 0, 1, 1], [], []>} : vector<16x32xbf16>, vector<32x128xbf16>, vector<16x128xf32> -> vector<16x128xf32>
    %53 = arith.addf %33, %52 : vector<16x128xf32>
    %54 = vector.extract_strided_slice %31 {offsets = [0, 32], sizes = [16, 32], strides = [1, 1]} : vector<16x384xbf16> to vector<16x32xbf16>
    %55 = vector.extract_strided_slice %31 {offsets = [0, 160], sizes = [16, 32], strides = [1, 1]} : vector<16x384xbf16> to vector<16x32xbf16>
    %56 = vector.extract_strided_slice %31 {offsets = [0, 288], sizes = [16, 32], strides = [1, 1]} : vector<16x384xbf16> to vector<16x32xbf16>
    %cst_21 = arith.constant dense<0.000000e+00> : vector<16x16xf32>
    %57 = tpu.matmul %54, %55, %cst_21 {dimension_numbers = #tpu.dot_dimension_numbers<[1], [1], [0], [0], [0, 0, 1, 0], [], []>} : vector<16x32xbf16>, vector<16x32xbf16>, vector<16x16xf32> -> vector<16x16xf32>
    %cst_22 = arith.constant dense<0xFF800000> : vector<16xf32>
    %58 = vector.multi_reduction <maximumf>, %57, %cst_22 [1] : vector<16x16xf32> to vector<16xf32>
    %59 = vector.shape_cast %58 : vector<16xf32> to vector<16x1xf32>
    %60 = vector.broadcast %59 : vector<16x1xf32> to vector<16x16xf32>
    %61 = arith.subf %57, %60 : vector<16x16xf32>
    %62 = math.exp %61 : vector<16x16xf32>
    %cst_23 = arith.constant dense<0.000000e+00> : vector<16xf32>
    %63 = vector.multi_reduction <add>, %62, %cst_23 [1] : vector<16x16xf32> to vector<16xf32>
    %64 = vector.shape_cast %63 : vector<16xf32> to vector<16x1xf32>
    %65 = tpu.reciprocal %64 {approx = true} : vector<16x1xf32> -> vector<16x1xf32>
    %66 = vector.broadcast %65 : vector<16x1xf32> to vector<16x16xf32>
    %67 = arith.mulf %62, %66 : vector<16x16xf32>
    %68 = arith.truncf %67 : vector<16x16xf32> to vector<16x16xbf16>
    %cst_24 = arith.constant dense<0.000000e+00> : vector<16x32xf32>
    %69 = tpu.matmul %68, %56, %cst_24 {dimension_numbers = #tpu.dot_dimension_numbers<[1], [0], [0], [1], [0, 0, 1, 1], [], []>} : vector<16x16xbf16>, vector<16x32xbf16>, vector<16x32xf32> -> vector<16x32xf32>
    %70 = arith.truncf %69 : vector<16x32xf32> to vector<16x32xbf16>
    %71 = vector.extract_strided_slice %32 {offsets = [32, 0], sizes = [32, 128], strides = [1, 1]} : vector<128x128xbf16> to vector<32x128xbf16>
    %cst_25 = arith.constant dense<0.000000e+00> : vector<16x128xf32>
    %72 = tpu.matmul %70, %71, %cst_25 {dimension_numbers = #tpu.dot_dimension_numbers<[1], [0], [0], [1], [0, 0, 1, 1], [], []>} : vector<16x32xbf16>, vector<32x128xbf16>, vector<16x128xf32> -> vector<16x128xf32>
    %73 = arith.addf %53, %72 : vector<16x128xf32>
    %74 = vector.extract_strided_slice %31 {offsets = [0, 64], sizes = [16, 32], strides = [1, 1]} : vector<16x384xbf16> to vector<16x32xbf16>
    %75 = vector.extract_strided_slice %31 {offsets = [0, 192], sizes = [16, 32], strides = [1, 1]} : vector<16x384xbf16> to vector<16x32xbf16>
    %76 = vector.extract_strided_slice %31 {offsets = [0, 320], sizes = [16, 32], strides = [1, 1]} : vector<16x384xbf16> to vector<16x32xbf16>
    %cst_26 = arith.constant dense<0.000000e+00> : vector<16x16xf32>
    %77 = tpu.matmul %74, %75, %cst_26 {dimension_numbers = #tpu.dot_dimension_numbers<[1], [1], [0], [0], [0, 0, 1, 0], [], []>} : vector<16x32xbf16>, vector<16x32xbf16>, vector<16x16xf32> -> vector<16x16xf32>
    %cst_27 = arith.constant dense<0xFF800000> : vector<16xf32>
    %78 = vector.multi_reduction <maximumf>, %77, %cst_27 [1] : vector<16x16xf32> to vector<16xf32>
    %79 = vector.shape_cast %78 : vector<16xf32> to vector<16x1xf32>
    %80 = vector.broadcast %79 : vector<16x1xf32> to vector<16x16xf32>
    %81 = arith.subf %77, %80 : vector<16x16xf32>
    %82 = math.exp %81 : vector<16x16xf32>
    %cst_28 = arith.constant dense<0.000000e+00> : vector<16xf32>
    %83 = vector.multi_reduction <add>, %82, %cst_28 [1] : vector<16x16xf32> to vector<16xf32>
    %84 = vector.shape_cast %83 : vector<16xf32> to vector<16x1xf32>
    %85 = tpu.reciprocal %84 {approx = true} : vector<16x1xf32> -> vector<16x1xf32>
    %86 = vector.broadcast %85 : vector<16x1xf32> to vector<16x16xf32>
    %87 = arith.mulf %82, %86 : vector<16x16xf32>
    %88 = arith.truncf %87 : vector<16x16xf32> to vector<16x16xbf16>
    %cst_29 = arith.constant dense<0.000000e+00> : vector<16x32xf32>
    %89 = tpu.matmul %88, %76, %cst_29 {dimension_numbers = #tpu.dot_dimension_numbers<[1], [0], [0], [1], [0, 0, 1, 1], [], []>} : vector<16x16xbf16>, vector<16x32xbf16>, vector<16x32xf32> -> vector<16x32xf32>
    %90 = arith.truncf %89 : vector<16x32xf32> to vector<16x32xbf16>
    %91 = vector.extract_strided_slice %32 {offsets = [64, 0], sizes = [32, 128], strides = [1, 1]} : vector<128x128xbf16> to vector<32x128xbf16>
    %cst_30 = arith.constant dense<0.000000e+00> : vector<16x128xf32>
    %92 = tpu.matmul %90, %91, %cst_30 {dimension_numbers = #tpu.dot_dimension_numbers<[1], [0], [0], [1], [0, 0, 1, 1], [], []>} : vector<16x32xbf16>, vector<32x128xbf16>, vector<16x128xf32> -> vector<16x128xf32>
    %93 = arith.addf %73, %92 : vector<16x128xf32>
    %94 = vector.extract_strided_slice %31 {offsets = [0, 96], sizes = [16, 32], strides = [1, 1]} : vector<16x384xbf16> to vector<16x32xbf16>
    %95 = vector.extract_strided_slice %31 {offsets = [0, 224], sizes = [16, 32], strides = [1, 1]} : vector<16x384xbf16> to vector<16x32xbf16>
    %96 = vector.extract_strided_slice %31 {offsets = [0, 352], sizes = [16, 32], strides = [1, 1]} : vector<16x384xbf16> to vector<16x32xbf16>
    %cst_31 = arith.constant dense<0.000000e+00> : vector<16x16xf32>
    %97 = tpu.matmul %94, %95, %cst_31 {dimension_numbers = #tpu.dot_dimension_numbers<[1], [1], [0], [0], [0, 0, 1, 0], [], []>} : vector<16x32xbf16>, vector<16x32xbf16>, vector<16x16xf32> -> vector<16x16xf32>
    %cst_32 = arith.constant dense<0xFF800000> : vector<16xf32>
    %98 = vector.multi_reduction <maximumf>, %97, %cst_32 [1] : vector<16x16xf32> to vector<16xf32>
    %99 = vector.shape_cast %98 : vector<16xf32> to vector<16x1xf32>
    %100 = vector.broadcast %99 : vector<16x1xf32> to vector<16x16xf32>
    %101 = arith.subf %97, %100 : vector<16x16xf32>
    %102 = math.exp %101 : vector<16x16xf32>
    %cst_33 = arith.constant dense<0.000000e+00> : vector<16xf32>
    %103 = vector.multi_reduction <add>, %102, %cst_33 [1] : vector<16x16xf32> to vector<16xf32>
    %104 = vector.shape_cast %103 : vector<16xf32> to vector<16x1xf32>
    %105 = tpu.reciprocal %104 {approx = true} : vector<16x1xf32> -> vector<16x1xf32>
    %106 = vector.broadcast %105 : vector<16x1xf32> to vector<16x16xf32>
    %107 = arith.mulf %102, %106 : vector<16x16xf32>
    %108 = arith.truncf %107 : vector<16x16xf32> to vector<16x16xbf16>
    %cst_34 = arith.constant dense<0.000000e+00> : vector<16x32xf32>
    %109 = tpu.matmul %108, %96, %cst_34 {dimension_numbers = #tpu.dot_dimension_numbers<[1], [0], [0], [1], [0, 0, 1, 1], [], []>} : vector<16x16xbf16>, vector<16x32xbf16>, vector<16x32xf32> -> vector<16x32xf32>
    %110 = arith.truncf %109 : vector<16x32xf32> to vector<16x32xbf16>
    %111 = vector.extract_strided_slice %32 {offsets = [96, 0], sizes = [32, 128], strides = [1, 1]} : vector<128x128xbf16> to vector<32x128xbf16>
    %cst_35 = arith.constant dense<0.000000e+00> : vector<16x128xf32>
    %112 = tpu.matmul %110, %111, %cst_35 {dimension_numbers = #tpu.dot_dimension_numbers<[1], [0], [0], [1], [0, 0, 1, 1], [], []>} : vector<16x32xbf16>, vector<32x128xbf16>, vector<16x128xf32> -> vector<16x128xf32>
    %113 = arith.addf %93, %112 : vector<16x128xf32>
    %c0_36 = arith.constant 0 : index
    %c0_37 = arith.constant 0 : index
    %114 = vector.load %arg6[%c0_36, %c0_37] : memref<1x128xf32, #tpu.memory_space<vmem>>, vector<1x128xf32>
    %115 = vector.broadcast %114 : vector<1x128xf32> to vector<16x128xf32>
    %116 = arith.addf %113, %115 : vector<16x128xf32>
    %117 = arith.addf %1, %116 : vector<16x128xf32>
    %c0_38 = arith.constant 0 : index
    %c0_39 = arith.constant 0 : index
    %118 = vector.load %arg7[%c0_38, %c0_39] : memref<1x128xf32, #tpu.memory_space<vmem>>, vector<1x128xf32>
    %c0_40 = arith.constant 0 : index
    %c0_41 = arith.constant 0 : index
    %119 = vector.load %arg8[%c0_40, %c0_41] : memref<1x128xf32, #tpu.memory_space<vmem>>, vector<1x128xf32>
    %cst_42 = arith.constant dense<0.000000e+00> : vector<16xf32>
    %120 = vector.multi_reduction <add>, %117, %cst_42 [1] : vector<16x128xf32> to vector<16xf32>
    %121 = vector.shape_cast %120 : vector<16xf32> to vector<16x1xf32>
    %cst_43 = arith.constant 1.280000e+02 : f32
    %122 = vector.broadcast %cst_43 : f32 to vector<16x1xf32>
    %123 = arith.divf %121, %122 : vector<16x1xf32>
    %124 = vector.broadcast %123 : vector<16x1xf32> to vector<16x128xf32>
    %125 = arith.subf %117, %124 : vector<16x128xf32>
    %126 = vector.broadcast %123 : vector<16x1xf32> to vector<16x128xf32>
    %127 = arith.subf %117, %126 : vector<16x128xf32>
    %128 = arith.mulf %125, %127 : vector<16x128xf32>
    %cst_44 = arith.constant dense<0.000000e+00> : vector<16xf32>
    %129 = vector.multi_reduction <add>, %128, %cst_44 [1] : vector<16x128xf32> to vector<16xf32>
    %130 = vector.shape_cast %129 : vector<16xf32> to vector<16x1xf32>
    %cst_45 = arith.constant 1.280000e+02 : f32
    %131 = vector.broadcast %cst_45 : f32 to vector<16x1xf32>
    %132 = arith.divf %130, %131 : vector<16x1xf32>
    %133 = vector.broadcast %123 : vector<16x1xf32> to vector<16x128xf32>
    %134 = arith.subf %117, %133 : vector<16x128xf32>
    %cst_46 = arith.constant 9.99999974E-6 : f32
    %135 = vector.broadcast %cst_46 : f32 to vector<16x1xf32>
    %136 = arith.addf %132, %135 : vector<16x1xf32>
    %137 = math.rsqrt %136 : vector<16x1xf32>
    %138 = vector.broadcast %137 : vector<16x1xf32> to vector<16x128xf32>
    %139 = arith.mulf %134, %138 : vector<16x128xf32>
    %140 = vector.broadcast %118 : vector<1x128xf32> to vector<16x128xf32>
    %141 = arith.mulf %139, %140 : vector<16x128xf32>
    %142 = vector.broadcast %119 : vector<1x128xf32> to vector<16x128xf32>
    %143 = arith.addf %141, %142 : vector<16x128xf32>
    %144 = arith.truncf %143 : vector<16x128xf32> to vector<16x128xbf16>
    %c0_47 = arith.constant 0 : index
    %c0_48 = arith.constant 0 : index
    %145 = vector.load %arg9[%c0_47, %c0_48] : memref<128x512xbf16, #tpu.memory_space<vmem>>, vector<128x512xbf16>
    %cst_49 = arith.constant dense<0.000000e+00> : vector<16x512xf32>
    %146 = tpu.matmul %144, %145, %cst_49 {dimension_numbers = #tpu.dot_dimension_numbers<[1], [0], [0], [1], [0, 0, 1, 1], [], []>} : vector<16x128xbf16>, vector<128x512xbf16>, vector<16x512xf32> -> vector<16x512xf32>
    %c0_50 = arith.constant 0 : index
    %c0_51 = arith.constant 0 : index
    %147 = vector.load %arg10[%c0_50, %c0_51] : memref<1x512xf32, #tpu.memory_space<vmem>>, vector<1x512xf32>
    %148 = vector.broadcast %147 : vector<1x512xf32> to vector<16x512xf32>
    %149 = arith.addf %146, %148 : vector<16x512xf32>
    %cst_52 = arith.constant 5.000000e-01 : f32
    %150 = vector.broadcast %cst_52 : f32 to vector<16x512xf32>
    %151 = arith.mulf %150, %149 : vector<16x512xf32>
    %cst_53 = arith.constant 0.707106769 : f32
    %152 = vector.broadcast %cst_53 : f32 to vector<16x512xf32>
    %153 = arith.mulf %149, %152 : vector<16x512xf32>
    %154 = math.erf %153 : vector<16x512xf32>
    %cst_54 = arith.constant 1.000000e+00 : f32
    %155 = vector.broadcast %cst_54 : f32 to vector<16x512xf32>
    %156 = arith.addf %155, %154 : vector<16x512xf32>
    %157 = arith.mulf %151, %156 : vector<16x512xf32>
    %158 = arith.truncf %157 : vector<16x512xf32> to vector<16x512xbf16>
    %c0_55 = arith.constant 0 : index
    %c0_56 = arith.constant 0 : index
    %159 = vector.load %arg11[%c0_55, %c0_56] : memref<512x128xbf16, #tpu.memory_space<vmem>>, vector<512x128xbf16>
    %cst_57 = arith.constant dense<0.000000e+00> : vector<16x128xf32>
    %160 = tpu.matmul %158, %159, %cst_57 {dimension_numbers = #tpu.dot_dimension_numbers<[1], [0], [0], [1], [0, 0, 1, 1], [], []>} : vector<16x512xbf16>, vector<512x128xbf16>, vector<16x128xf32> -> vector<16x128xf32>
    %c0_58 = arith.constant 0 : index
    %c0_59 = arith.constant 0 : index
    %161 = vector.load %arg12[%c0_58, %c0_59] : memref<1x128xf32, #tpu.memory_space<vmem>>, vector<1x128xf32>
    %162 = vector.broadcast %161 : vector<1x128xf32> to vector<16x128xf32>
    %163 = arith.addf %160, %162 : vector<16x128xf32>
    %164 = arith.addf %117, %163 : vector<16x128xf32>
    %165 = vector.shape_cast %164 : vector<16x128xf32> to vector<1x16x128xf32>
    %c0_60 = arith.constant 0 : index
    %c0_61 = arith.constant 0 : index
    %c0_62 = arith.constant 0 : index
    %166 = vector.load %arg13[%c0_60, %c0_61, %c0_62] : memref<1x16x128xf32, #tpu.memory_space<vmem>>, vector<1x16x128xf32>
    tpu.vector_store %arg13[%c0_60, %c0_61, %c0_62], %165 {strides = array<i32>} : memref<1x16x128xf32, #tpu.memory_space<vmem>>, vector<1x16x128xf32>,
    return
  }
  func.func @transform_0(%arg0: i32) -> (i32, i32, i32) {
    %c0_i32 = arith.constant 0 : i32
    %c0_i32_0 = arith.constant 0 : i32
    %c0_i32_1 = arith.constant 0 : i32
    return %arg0, %c0_i32, %c0_i32_0 : i32, i32, i32
  }
  func.func @transform_1(%arg0: i32) -> (i32, i32) {
    %c0_i32 = arith.constant 0 : i32
    %c0_i32_0 = arith.constant 0 : i32
    %c0_i32_1 = arith.constant 0 : i32
    return %c0_i32, %c0_i32_0 : i32, i32
  }
  func.func @transform_2(%arg0: i32) -> (i32, i32) {
    %c0_i32 = arith.constant 0 : i32
    %c0_i32_0 = arith.constant 0 : i32
    %c0_i32_1 = arith.constant 0 : i32
    return %c0_i32, %c0_i32_0 : i32, i32
  }
  func.func @transform_3(%arg0: i32) -> (i32, i32) {
    %c0_i32 = arith.constant 0 : i32
    %c0_i32_0 = arith.constant 0 : i32
    %c0_i32_1 = arith.constant 0 : i32
    return %c0_i32, %c0_i32_0 : i32, i32
  }
  func.func @transform_4(%arg0: i32) -> (i32, i32) {
    %c0_i32 = arith.constant 0 : i32
    %c0_i32_0 = arith.constant 0 : i32
    %c0_i32_1 = arith.constant 0 : i32
    return %c0_i32, %c0_i32_0 : i32, i32
  }
  func.func @transform_5(%arg0: i32) -> (i32, i32) {
    %c0_i32 = arith.constant 0 : i32
    %c0_i32_0 = arith.constant 0 : i32
    %c0_i32_1 = arith.constant 0 : i32
    return %c0_i32, %c0_i32_0 : i32, i32
  }
  func.func @transform_6(%arg0: i32) -> (i32, i32) {
    %c0_i32 = arith.constant 0 : i32
    %c0_i32_0 = arith.constant 0 : i32
    %c0_i32_1 = arith.constant 0 : i32
    return %c0_i32, %c0_i32_0 : i32, i32
  }
  func.func @transform_7(%arg0: i32) -> (i32, i32) {
    %c0_i32 = arith.constant 0 : i32
    %c0_i32_0 = arith.constant 0 : i32
    %c0_i32_1 = arith.constant 0 : i32
    return %c0_i32, %c0_i32_0 : i32, i32
  }
  func.func @transform_8(%arg0: i32) -> (i32, i32) {
    %c0_i32 = arith.constant 0 : i32
    %c0_i32_0 = arith.constant 0 : i32
    %c0_i32_1 = arith.constant 0 : i32
    return %c0_i32, %c0_i32_0 : i32, i32
  }
  func.func @transform_9(%arg0: i32) -> (i32, i32) {
    %c0_i32 = arith.constant 0 : i32
    %c0_i32_0 = arith.constant 0 : i32
    %c0_i32_1 = arith.constant 0 : i32
    return %c0_i32, %c0_i32_0 : i32, i32
  }
  func.func @transform_10(%arg0: i32) -> (i32, i32) {
    %c0_i32 = arith.constant 0 : i32
    %c0_i32_0 = arith.constant 0 : i32
    %c0_i32_1 = arith.constant 0 : i32
    return %c0_i32, %c0_i32_0 : i32, i32
  }
  func.func @transform_11(%arg0: i32) -> (i32, i32) {
    %c0_i32 = arith.constant 0 : i32
    %c0_i32_0 = arith.constant 0 : i32
    %c0_i32_1 = arith.constant 0 : i32
    return %c0_i32, %c0_i32_0 : i32, i32
  }
  func.func @transform_12(%arg0: i32) -> (i32, i32, i32) {
    %c0_i32 = arith.constant 0 : i32
    %c0_i32_0 = arith.constant 0 : i32
    %c0_i32_1 = arith.constant 0 : i32
    return %arg0, %c0_i32, %c0_i32_0 : i32, i32, i32
  }
}

</mosaic_0001>

<bundles_post_ra>
// kernel: tpu_custom_call.1
= control target key start
LH: loop header
LB: loop body
LE: loop exit
PB: predicated region body
PF: predicated region fallthrough
CT: control target
= control target key end

     0   :  { %s3671_s0 = inlined_call_operand.hbm [shape: f32[2,16,128], index: 0, kind: input, shape index: {}]   ;;  %s3672_s1 = inlined_call_operand.vmem [shape: f32[1,128], index: 1, kind: input, shape index: {}]   ;;  %s3673_s2 = inlined_call_operand.vmem [shape: f32[1,128], index: 2, kind: input, shape index: {}]   ;;  %s3674_s3 = inlined_call_operand.hbm [shape: bf16[128,384], index: 3, kind: input, shape index: {}]   ;;  %s3675_s4 = inlined_call_operand.hbm [shape: bf16[128,128], index: 4, kind: input, shape index: {}]   ;;  %s3676_s5 = inlined_call_operand.vmem [shape: f32[1,128], index: 5, kind: input, shape index: {}]   ;;  %s3677_s6 = inlined_call_operand.vmem [shape: f32[1,128], index: 6, kind: input, shape index: {}]   ;;  %s3678_s7 = inlined_call_operand.vmem [shape: f32[1,128], index: 7, kind: input, shape index: {}]   ;;  %s3679_s8 = inlined_call_operand.hbm [shape: bf16[128,512], index: 8, kind: input, shape index: {}]   ;;  %s3680_s9 = inlined_call_operand.vmem [shape: f32[1,512], index: 9, kind: input, shape index: {}]   ;;  %s3681_s10 = inlined_call_operand.hbm [shape: bf16[512,128], index: 10, kind: input, shape index: {}]   ;;  %s3682_s11 = inlined_call_operand.vmem [shape: f32[1,128], index: 11, kind: input, shape index: {}]   ;;  %s3683_s12 = inlined_call_operand.hbm [shape: f32[2,16,128], index: 12, kind: output, shape index: {}]  }
   0x1   :  { %3690 = sst [smem:[#allocation18_spill]] %s3674_s3 }
   0x2   :  { %3691 = sst [smem:[#allocation19_spill]] %s3675_s4 }
   0x3   :  { %3692 = sst [smem:[#allocation20_spill]] %s3679_s8 }
   0x4   :  { %3693 = sst [smem:[#allocation21_spill]] %s3681_s10 }
   0x5   :  { %17 = vsyncpa [#allocation3], 0 }
   0x6   :  { %19 = vsyncpa [#allocation3 + $0x1], 0 }
   0x7   :  { %20 = vsyncpa [#allocation6], 0 }
   0x8   :  { %21 = vsyncpa [#allocation9], 0 }
   0x9   :  { %22 = vsyncpa [#allocation4], 0 }
   0xa   :  { %24 = vsyncpa [#allocation4 + $0x1], 0  ;;  %s3274_s21 = smov 0   ;;  %s3276_s22 = smov 0  }
   0xb   :  { %s3278_s23 = smov 0   ;;  %s3280_s24 = smov 0  }
   0xc LB: > { %3694 = sst [smem:[#allocation16_spill]] %s3173_s21  ;;  %s3295_s25 = sadd.s32 4294967295, %s3185_s24   ;;  %s3185_s24 = sphi %s3280_s24, %s3721_s24   ;;  %s3181_s23 = sphi %s3278_s23, %s3720_s23   ;;  %s3177_s22 = sphi %s3276_s22, %s3719_s22   ;;  %s3173_s21 = sphi %s3274_s21, %s3718_s21  }
   0xd   : > { %s2382_s26 = sadd.s32 4294967294, %s3185_s24   ;;  %p50_p0 = scmp.ne.s32.totalorder %s3177_s22, %s3173_s21 }
   0xe   : > { %p3684_p1 = scmp.eq.s32.totalorder %s3295_s25, 0  ;;  %p311_p3 = scmp.eq.s32.totalorder %s2382_s26, 1 }
   0xf   : > { %p2383_p5 = scmp.ge.s32.totalorder %s3185_s24, 1  ;;  %p318_p7 = scmp.lt.s32.totalorder %s3185_s24, 3 }
  0x10   : > { %p3304_p4 = por %p3684_p1, %p50_p0  ;;  %p3309_p6 = por %p311_p3, %p50_p0 }
  0x11   : > { %p3314_p8 = pnand %p2383_p5, %p318_p7  ;;  %s3187_s30 = smov [#allocation5]  }
  0x12   : > { %s3695_s27 = scalar_select %p3304_p4, 1, 0 }
  0x13   : > { %s3696_s28 = scalar_select %p3309_p6, 1, 0 }
  0x14   : > { %s3698_s29 = scalar_select %p3314_p8, 1, 0 }
  0x15   : > { %3697 = sst [smem:[#allocation17_spill]] %s3696_s28  ;;  %s336_s13 = sshll.u32 %s3187_s30, 4  ;;  %s337_s13 = int_to_ptr.vmem [resolvable:$true] %s336_s13 }
  0x16   : > { %p2721_p9 = pneg %p3314_p8  ;;  %s3188_s15 = smov [#allocation8]  }
  0x17   : > { %s371_s16 = sshll.u32 %s3188_s15, 4  ;;  %s2992_s17 = scalar_lea.vmem %s337_s13, 3072  ;;  %s372_s16 = int_to_ptr.vmem [resolvable:$true] %s371_s16 }
  0x18   : > { %p3323_p11 = pnand %p2721_p9, %p3684_p1  ;;  %p2993_p13 = scmp.ne.s32.totalorder %s337_s13, %s2992_s17 }
  0x19   : > { %p3000_p5 = scmp.lt.s32.totalorder %s337_s13, %s337_s13  ;;  %p3001_p7 = scmp.lt.s32.totalorder %s2992_s17, %s2992_s17 }
  0x1a   : > { %p2983_p12 = pneg %p3323_p11 }
  0x1b   : > { %p3002_p10 = por %p3001_p7, %p3000_p5 }
  0x1c   : > { %p2995_p0 = pnand %p2993_p13, %p2983_p12 }
  0x1e   : > { %p2996_p3 = pneg %p2995_p0 }
  0x20   : > { %p3003_p9 = pnand %p3002_p10, %p2996_p3 }
  0x22   : > { %3006 = shalt.err (!%p3003_p9)
}
  0x23   : > { %s3189_s18 = smov 192   ;;  %s3190_s19 = smov 12  }
  0x24   : > { %s3700_s3 = sld [smem:[#allocation18_spill]]  ;;  %s3018_s30 = scalar_lea.vmem %s372_s16, 4096 }
  0x25   : > { %p3019_p1 = scmp.ne.s32.totalorder %s372_s16, %s3018_s30  ;;  %p3026_p2 = scmp.lt.s32.totalorder %s372_s16, %s372_s16 }
  0x26   : > { %p3027_p6 = scmp.lt.s32.totalorder %s3018_s30, %s3018_s30 }
  0x27   : > { %p3021_p13 = pnand %p3019_p1, %p2983_p12 }
  0x28   : > { %p3028_p5 = por %p3027_p6, %p3026_p2 }
  0x29   : > { %p3022_p0 = pneg %p3021_p13 }
  0x2a   : > { %2724 = dma.hbm_to_vmem [thread:$0]  (!%p3323_p11), %s3700_s3, 3072, %s337_s13, [#allocation6], %s3189_s18, %s3189_s18, %s3190_s19  }
  0x2b   : > { %p3029_p10 = pnand %p3028_p5, %p3022_p0 }
  0x2d   : > { %3032 = shalt.err (!%p3029_p10)
}
  0x2e   : > { %s3191_s15 = smov 256   ;;  %s3192_s17 = smov 16  }
  0x2f   : > { %s3701_s8 = sld [smem:[#allocation20_spill]]  ;;  %s3193_s13 = smov [#allocation7]  }
  0x30   : > { %s349_s18 = sshll.u32 %s3193_s13, 4  ;;  %s350_s18 = int_to_ptr.vmem [resolvable:$true] %s349_s18 }
  0x31   : > { %s3044_s19 = scalar_lea.vmem %s350_s18, 1024  ;;  %p3052_p6 = scmp.lt.s32.totalorder %s350_s18, %s350_s18 }
  0x32   : > { %p3045_p1 = scmp.ne.s32.totalorder %s350_s18, %s3044_s19  ;;  %p3053_p7 = scmp.lt.s32.totalorder %s3044_s19, %s3044_s19 }
  0x34   : > { %p3047_p3 = pnand %p3045_p1, %p2983_p12  ;;  %p3054_p9 = por %p3053_p7, %p3052_p6 }
  0x35   : > { %2730 = dma.hbm_to_vmem [thread:$0]  (!%p3323_p11), %s3701_s8, 4096, %s372_s16, [#allocation9], %s3191_s15, %s3191_s15, %s3192_s17  }
  0x36   : > { %p3048_p2 = pneg %p3047_p3 }
  0x38   : > { %p3055_p13 = pnand %p3054_p9, %p3048_p2 }
  0x3a   : > { %3058 = shalt.err (!%p3055_p13)
}
  0x3b   : > { %s3194_s20 = smov 64   ;;  %s3195_s26 = smov 4  }
  0x3c   : > { %s3702_s4 = sld [smem:[#allocation19_spill]]  ;;  %s3196_s16 = smov [#allocation10]  }
  0x3d   : > { %s387_s30 = sshll.u32 %s3196_s16, 4  ;;  %s388_s30 = int_to_ptr.vmem [resolvable:$true] %s387_s30 }
  0x3e   : > { %s3070_s15 = scalar_lea.vmem %s388_s30, 4096  ;;  %p3078_p1 = scmp.lt.s32.totalorder %s388_s30, %s388_s30 }
  0x3f   : > { %p3071_p0 = scmp.ne.s32.totalorder %s388_s30, %s3070_s15  ;;  %p3079_p3 = scmp.lt.s32.totalorder %s3070_s15, %s3070_s15 }
  0x41   : > { %p3073_p5 = pnand %p3071_p0, %p2983_p12  ;;  %p3080_p2 = por %p3079_p3, %p3078_p1 }
  0x42   : > { %2727 = dma.hbm_to_vmem [thread:$0]  (!%p3323_p11), %s3702_s4, 1024, %s350_s18, [#allocation6], %s3194_s20, %s3194_s20, %s3195_s26  }
  0x43   : > { %p3074_p10 = pneg %p3073_p5 }
  0x45   : > { %p3081_p6 = pnand %p3080_p2, %p3074_p10 }
  0x47   : > { %3084 = shalt.err (!%p3081_p6)
}
  0x48   : > { %s3703_s10 = sld [smem:[#allocation21_spill]]  ;;  %s3362_s18 = sadd.s32 1, %s3185_s24  }
  0x49   : > { %s37_s19 = sadd.s32 1, %s3181_s23  ;;  %s34_s14 = ssub.s32 %s3185_s24, %s3362_s18 }
  0x4a   : > { %p44_p12 = scmp.ne.s32.totalorder %s3181_s23, %s3177_s22  ;;  %p35_p7 = scmp.eq.s32.totalorder %s34_s14, 0 }
  0x4b   : > { %p45_p9 = scmp.eq.s32.totalorder %s3185_s24, 0  ;;  %p3704_p13 = scmp.eq.s32.totalorder %s3295_s25, 1 }
  0x4c   : > { %p2746_p5 = scmp.lt.s32.totalorder %s3185_s24, 2  ;;  %s404_s16 = sand.u32 1, %s3181_s23  }
  0x4d   : > { %p3372_p0 = por %p3704_p13, %p44_p12  ;;  %p46_p10 = por %p45_p9, %p44_p12 }
  0x4e   : > { %2733 = dma.hbm_to_vmem [thread:$0]  (!%p3323_p11), %s3703_s10, 4096, %s388_s30, [#allocation9], %s3194_s20, %s3194_s20, %s3195_s26  }
  0x4f   : > { %s3705_s21 = scalar_select %p3372_p0, 1, 0 }
  0x50   : > { %s3378_s28 = scalar_select %p35_p7, %s3181_s23, %s37_s19  }
  0x51   : > { %s2389_s15 = sshll.u32 %s404_s16, 4  ;;  %s2518_s20 = sshll.u32 %s3185_s24, 8 }
  0x52   : > { %s3385_s17 = scalar_lea.hbm %s3671_s0, %s2518_s20  ;;  %s408_s13 = scalar_lea.vmem [#allocation2], %s2389_s15 }
  0x53   : > { %s415_s14 = sshll.u32 %s408_s13, 4  ;;  %p3389_p11 = pnand %p2746_p5, %p46_p10  ;;  %s3387_s14 = int_to_ptr.vmem [resolvable:$true] %s415_s14 }
  0x54   : > { %s3393_s19 = scalar_lea.sflag [#allocation3], %s404_s16  ;;  %s3085_s4 = scalar_lea.hbm %s3385_s17, 256 }
  0x55   : > { %p3086_p1 = scmp.ne.s32.totalorder %s3385_s17, %s3085_s4  ;;  %p3087_p3 = pneg %p3389_p11 }
  0x56   : > { %s3090_s15 = scalar_lea.hbm %s3671_s0, 512  ;;  %p3091_p12 = scmp.lt.s32.totalorder %s3385_s17, %s3671_s0 }
  0x57   : > { %p3088_p2 = pnand %p3087_p3, %p3086_p1  ;;  %p3092_p7 = scmp.lt.s32.totalorder %s3090_s15, %s3085_s4 }
  0x59   : > { %p3089_p6 = pneg %p3088_p2  ;;  %p3093_p9 = por %p3092_p7, %p3091_p12 }
  0x5b   : > { %p3094_p13 = pnand %p3093_p9, %p3089_p6 }
  0x5d   : > { %3097 = shalt.err (!%p3094_p13)
}
  0x5e   : > { %s3098_s16 = scalar_lea.vmem %s3387_s14, 256  ;;  %s3197_s8 = smov [#allocation2]  }
  0x5f   : > { %p3099_p5 = scmp.ne.s32.totalorder %s3387_s14, %s3098_s16  ;;  %s3103_s10 = sshll.u32 %s3197_s8, 4  ;;  %s3104_s10 = int_to_ptr.vmem [resolvable:$false] %s3103_s10 }
  0x60   : > { %s3105_s20 = scalar_lea.vmem %s3104_s10, 512  ;;  %p3106_p2 = scmp.lt.s32.totalorder %s3387_s14, %s3104_s10 }
  0x61   : > { %p3101_p10 = pnand %p3099_p5, %p3087_p3  ;;  %p3107_p0 = scmp.lt.s32.totalorder %s3105_s20, %s3098_s16 }
  0x63   : > { %p3102_p1 = pneg %p3101_p10  ;;  %p3108_p4 = por %p3107_p0, %p3106_p2 }
  0x65   : > { %p3109_p8 = pnand %p3108_p4, %p3102_p1 }
  0x67   : > { %3112 = shalt.err (!%p3109_p8)
}
  0x68   : > { %s3198_s4 = smov 128   ;;  %s3199_s26 = smov 8  }
  0x69   : > { %2737 = dma.hbm_to_vmem [thread:$0]  (!%p3389_p11), %s3385_s17, 256, %s3387_s14, %s3393_s19, %s3198_s4, %s3198_s4, %s3199_s26  }
  0x6a   : > { %p3707_p3 = scmp.ne.s32.totalorder %s3698_s29, 0 }
  0x6b   : > { %s3417_s8 = sand.u32 (!%p3707_p3), 1, %s3177_s22   ;;  %p3708_p4 = scmp.ne.s32.totalorder (!%p3707_p3), %s3695_s27, 0 }
  0x6c   : > { %427 = sbr.rel (%p3707_p3) target bundleno = 3661 (0xe4d), region = 68  ;;  %s2393_s10 = sshll.u32 (!%p3707_p3), %s3417_s8, 4 }
  0x6d   : > { %s430_s15 = scalar_lea.sflag (!%p3707_p3), [#allocation3], %s3417_s8  ;;  %s3423_s30 = scalar_lea.vmem (!%p3707_p3), [#allocation2], %s2393_s10 }
  0x71   : > { %3156 = dma.done.wait (%p3708_p4), %s430_s15, 256  }
  0x72   : > { %3158 = vsyncadd (%p3708_p4), %s430_s15, 4294967040  ;;  %p3709_p8 = scmp.eq.s32.totalorder %s3295_s25, 0 }
  0x74   : > { %3160 = dma.done.wait (%p3709_p8), [#allocation6], 4096   ;;  %p3710_p0 = pmov %p3709_p8 }
  0x76   : > { %3162 = vsyncadd (%p3710_p0), [#allocation6], 4294963200  ;;  %p3711_p11 = pmov %p3710_p0 }
  0x77   : > { %p3712_p6 = pmov %p3710_p0 }
  0x78   : > { %3164 = dma.done.wait (%p3711_p11), [#allocation9], 8192  }
  0x79   : > { %3166 = vsyncadd (%p3712_p6), [#allocation9], 4294959104  ;;  %v3438_v0 = vld [vmem:[%s3423_s30] sm:$0xff]  ;;  %v492_v1 = vld [vmem:[%s3423_s30 + $0x8] sm:$0xff]  ;;  %v3200_v4 = vmov 0.0   ;;  %v3201_v27 = vmov 0  }
  0x7a   : > { %495 = vadd.xlane.f32.xlu0 %v3438_v0  ;;  %v2804_v2 = vld [vmem:[#allocation5 + $0xac] ss:$12 sps:$4 sm:$0xff]   ;;  %v2806_v3 = vld [vmem:[#allocation5 + $0xa8] ss:$12 sps:$4 sm:$0xff]   ;;  %2601 = vmatprep.subr.bf16.mxu1 %v3200_v4  ;;  %v2807_v5 = vld [vmem:[#allocation5 + $0xb0] ss:$12 sps:$4 sm:$0xff]  }
  0x7b   : > { %695 = vmatprep.subr.bf16.mxu0 %v2804_v2  ;;  %2602 = vmatpush3.bf16.msra.mxu1 %v2807_v5  ;;  %v2808_v14 = vld [vmem:[#allocation5 + $0x94] ss:$12 sps:$4 sm:$0xff]   ;;  %v2810_v15 = vld [vmem:[#allocation5 + $0x90] ss:$12 sps:$4 sm:$0xff]   ;;  %v2811_v16 = vld [vmem:[#allocation5 + $0x98] ss:$12 sps:$4 sm:$0xff]  }
  0x7c   : > { %696 = vmatpush1.bf16.msra.mxu0 %v2806_v3  ;;  %2603 = vmatprep.subr.bf16.mxu1 %v3200_v4  ;;  %v2812_v17 = vld [vmem:[#allocation5 + $0x7c] ss:$12 sps:$4 sm:$0xff]   ;;  %v2814_v18 = vld [vmem:[#allocation5 + $0x78] ss:$12 sps:$4 sm:$0xff]   ;;  %v2815_v19 = vld [vmem:[#allocation5 + $0x80] ss:$12 sps:$4 sm:$0xff]  }
  0x7d   : > { %697 = vmatprep.subr.bf16.mxu0 %v2808_v14  ;;  %v2816_v20 = vld [vmem:[#allocation5 + $0x64] ss:$12 sps:$4 sm:$0xff]   ;;  %v2818_v21 = vld [vmem:[#allocation5 + $0x60] ss:$12 sps:$4 sm:$0xff]   ;;  %v2819_v22 = vld [vmem:[#allocation5 + $0x68] ss:$12 sps:$4 sm:$0xff]   ;;  %727 = vmatprep.mubr.bf16.mxu0 %v3201_v27 }
  0x7e   : > { %497 = vadd.xlane.f32.xlu0 %v492_v1  ;;  %v2820_v23 = vld [vmem:[#allocation5 + $0x4c] ss:$12 sps:$4 sm:$0xff]   ;;  %v2822_v24 = vld [vmem:[#allocation5 + $0x48] ss:$12 sps:$4 sm:$0xff]   ;;  %v2823_v25 = vld [vmem:[#allocation5 + $0x50] ss:$12 sps:$4 sm:$0xff]  }
  0x7f   : > { %2604 = vmatpush3.bf16.msra.mxu1 %v2811_v16  ;;  %v2824_v26 = vld [vmem:[#allocation5 + $0x34] ss:$12 sps:$4 sm:$0xff]   ;;  %vm3202_vm0 = vmmov 0   ;;  %v2826_v28 = vld [vmem:[#allocation5 + $0x30] ss:$12 sps:$4 sm:$0xff]   ;;  %vm798_vm1 = vcmask 261120  }
  0x80   : > { %698 = vmatpush1.bf16.msra.mxu0 %v2810_v15  ;;  %2605 = vmatprep.subr.bf16.mxu1 %v3200_v4  ;;  %v2827_v29 = vld [vmem:[#allocation5 + $0x38] ss:$12 sps:$4 sm:$0xff]   ;;  %v2828_v30 = vld [vmem:[#allocation5 + $0x1c] ss:$12 sps:$4 sm:$0xff]   ;;  %v2831_v32 = vld [vmem:[#allocation5 + $0x20] ss:$12 sps:$4 sm:$0xff]  }
  0x81   : > { %699 = vmatprep.subr.bf16.mxu0 %v2812_v17  ;;  %2617 = vmatprep.mubr.msk.bf16.mxu1 %vm3202_vm0, %v3200_v4  ;;  %v2830_v31 = vld [vmem:[#allocation5 + $0x18] ss:$12 sps:$4 sm:$0xff]   ;;  %v2834_v34 = vld [vmem:[#allocation5] ss:$12 sps:$4 sm:$0xff]   ;;  %v2835_v35 = vld [vmem:[#allocation5 + $0x8] ss:$12 sps:$4 sm:$0xff]  }
  0x82   : > { %v2832_v33 = vld [vmem:[#allocation5 + $0x4] ss:$12 sps:$4 sm:$0xff]   ;;  %v2399_v44 = vld [vmem:[%s3672_s1] ss:$0 sm:$0xff]  ;;  %s3203_s14 = smov 96   ;;  %vm846_vm2 = vcmask 130048  }
  0x83   : > { %2606 = vmatpush3.bf16.msra.mxu1 %v2815_v19  ;;  %v2400_v48 = vld [vmem:[%s3673_s2] ss:$0 sm:$0xff]  ;;  %s3204_s19 = smov 64   ;;  %s3205_s13 = smov 32  }
  0x84   : > { %700 = vmatpush1.bf16.msra.mxu0 %v2814_v18  ;;  %2607 = vmatprep.subr.bf16.mxu1 %v3200_v4  ;;  %p3713_p7 = scmp.ne.s32.totalorder %s3705_s21, 0 }
  0x85   : > { %701 = vmatprep.subr.bf16.mxu0 %v2816_v20 }
  0x87   : > { %2608 = vmatpush3.bf16.msra.mxu1 %v2819_v22 }
  0x88   : > { %702 = vmatpush1.bf16.msra.mxu0 %v2818_v21  ;;  %2609 = vmatprep.subr.bf16.mxu1 %v3200_v4 }
  0x89   : > { %703 = vmatprep.subr.bf16.mxu0 %v2820_v23 }
  0x8b   : > { %2610 = vmatpush3.bf16.msra.mxu1 %v2823_v25 }
  0x8c   : > { %704 = vmatpush1.bf16.msra.mxu0 %v2822_v24  ;;  %2611 = vmatprep.subr.bf16.mxu1 %v3200_v4 }
  0x8d   : > { %705 = vmatprep.subr.bf16.mxu0 %v2824_v26 }
  0x8f   : > { %2612 = vmatpush3.bf16.msra.mxu1 %v2827_v29 }
  0x90   : > { %706 = vmatpush1.bf16.msra.mxu0 %v2826_v28  ;;  %2613 = vmatprep.subr.bf16.mxu1 %v3200_v4 }
  0x91   : > { %707 = vmatprep.subr.bf16.mxu0 %v2828_v30 }
  0x93   : > { %2614 = vmatpush3.bf16.msra.mxu1 %v2831_v32 }
  0x94   : > { %708 = vmatpush1.bf16.msra.mxu0 %v2830_v31  ;;  %2615 = vmatprep.subr.bf16.mxu1 %v3200_v4 }
  0x95   : > { %709 = vmatprep.subr.bf16.mxu0 %v2832_v33 }
  0x97   : > { %2616 = vmatpush3.bf16.msra.mxu1 %v2835_v35 }
  0x98   : > { %710 = vmatpush1.bf16.msra.mxu0 %v2834_v34  ;;  %2627 = vmatprep.subr.bf16.mxu1 %v3200_v4 }
  0x99   : > { %2621 = vmatprep.subr.bf16.mxu0 %v3200_v4 }
 0x103   : > { %v496_v6 = vpop.xlane.xlu0 %495 }
 0x104   : > { %v500_v7 = vmul.f32 0.0078125, %v496_v6 }
 0x106   : > { %v3445_v8 = vsub.f32 %v3438_v0, %v500_v7 }
 0x107   : > { %v498_v9 = vpop.xlane.xlu0 %497 }
 0x108   : > { %v501_v10 = vmul.f32 0.0078125, %v498_v9  ;;  %v504_v11 = vmul.f32 %v3445_v8, %v3445_v8 }
 0x10a   : > { %v3449_v12 = vsub.f32 %v492_v1, %v501_v10  ;;  %506 = vadd.xlane.f32.xlu1 %v504_v11 }
 0x10c   : > { %v505_v13 = vmul.f32 %v3449_v12, %v3449_v12 }
 0x10e   : > { %508 = vadd.xlane.f32.xlu1 %v505_v13 }
 0x193   : > { %v507_v36 = vpop.xlane.xlu1 %506 }
 0x194   : > { %v510_v37 = vmul.f32 0.0078125, %v507_v36 }
 0x196   : > { %v512_v38 = vadd.f32 1e-05, %v510_v37 }
 0x197   : > { %v509_v39 = vpop.xlane.xlu1 %508 }
 0x198   : > { %2924 = vrsqrt.f32 %v512_v38  ;;  %v511_v40 = vmul.f32 0.0078125, %v509_v39 }
 0x19a   : > { %v513_v41 = vadd.f32 1e-05, %v511_v40 }
 0x19c   : > { %2926 = vrsqrt.f32 %v513_v41 }
 0x1a5   : > { %v2925_v42 = vpop.eup %2924 }
 0x1a6   : > { %v516_v43 = vmul.f32 %v2925_v42, %v3445_v8 }
 0x1a8   : > { %v524_v47 = vmul.f32 %v2399_v44, %v516_v43 }
 0x1a9   : > { %v2927_v45 = vpop.eup %2926 }
 0x1aa   : > { %v517_v46 = vmul.f32 %v2927_v45, %v3449_v12  ;;  %v532_v50 = vadd.f32 %v2400_v48, %v524_v47 }
 0x1ac   : > { %v525_v49 = vmul.f32 %v2399_v44, %v517_v46  ;;  %v2838_v46 = vld [vmem:[#allocation7 + $0x18] sm:$0xff]  }
 0x1ae   : > { %v533_v51 = vadd.f32 %v2400_v48, %v525_v49 }
 0x1b0   : > { %v534_v52 = vpack.c.bf16 %v533_v51, %v532_v50 }
 0x1b2   : > { %728 = vmatmul.mubr.bf16.vlgmr.msra.gmra.mxu0 %v534_v52  ;;  %2618 = vmatmul.mubr.bf16.vlgmr.msra.gmra.mxu1 %v534_v52 }
 0x1b3   : > { %2623 = vmatprep.mubr.msk.bf16.mxu0 %vm3202_vm0, %v3200_v4  ;;  %2629 = vmatprep.mubr.msk.bf16.mxu1 %vm3202_vm0, %v3200_v4 }
 0x272   : > { %v729_v53 = vpop.f32.mrf.mxu0  ;;  %v772_v54 = vpop.f32.mrf.mxu1 }
 0x274   : > { %v731_v55 = vpop.f32.mrf.mxu0  ;;  %v2619_v56 = vpop.f32.mrf.mxu1 }
 0x275   : > { %v2837_v56 = vld [vmem:[#allocation7] sm:$0xff]  }
 0x276   : > { %v733_v57 = vpop.f32.mrf.mxu0  ;;  %v775_v58 = vpop.f32.mrf.mxu1 }
 0x277   : > { %v3476_v59 = vpack.c.bf16 %v733_v57, %v729_v53  ;;  %v3478_v60 = vpack.c.bf16 %v775_v58, %v772_v54  ;;  %v2836_v54 = vld [vmem:[#allocation7 + $0x8] sm:$0xff]   ;;  %v2839_v57 = vld [vmem:[#allocation7 + $0x10] sm:$0xff]  }
 0x278   : > { %v735_v61 = vpop.f32.mrf.mxu0  ;;  %v2620_v62 = vpop.f32.mrf.mxu1 }
 0x279   : > { %v3480_v63 = vpack.c.bf16 %v735_v61, %v731_v55  ;;  %2628 = vmatpush3.bf16.msra.mxu1 %v3478_v60  ;;  %916 = vrot.lane.b32.xlu1 %v3476_v59, %s3203_s14 }
 0x27a   : > { %2639 = vmatprep.subr.bf16.mxu1 %v3200_v4 }
 0x27b   : > { %919 = vrot.lane.b32.xlu0 %v3480_v63, %s3203_s14  ;;  %v803_v1 = vsel %vm798_vm1, %v3480_v63, 0 }
 0x27c   : > { %2622 = vmatpush3.bf16.xpose.msra.mxu0 %v803_v1 }
 0x27d   : > { %2633 = vmatprep.subr.bf16.mxu0 %v3200_v4 }
 0x283   : > { %2624 = vmatmul.mubr.msk.bf16.vlgmr.msra.gmra.mxu0 %vm798_vm1, %v3476_v59 }
 0x284   : > { %2635 = vmatprep.mubr.msk.bf16.mxu0 %vm3202_vm0, %v3200_v4 }
 0x2eb   : > { %v917_v5 = vpop.permute.xlu1 %916 }
 0x2ed   : > { %v920_v2 = vpop.permute.xlu0 %919 }
 0x2ee   : > { %v925_v3 = vsel %vm798_vm1, %v920_v2, 0 }
 0x2ef   : > { %2634 = vmatpush3.bf16.xpose.msra.mxu0 %v925_v3 }
 0x2f0   : > { %2645 = vmatprep.subr.bf16.mxu0 %v3200_v4 }
 0x2f6   : > { %2636 = vmatmul.mubr.msk.bf16.vlgmr.msra.gmra.mxu0 %vm798_vm1, %v917_v5 }
 0x2f7   : > { %2649 = vmatprep.mubr.msk.bf16.mxu0 %vm3202_vm0, %v3200_v4  ;;  %2646 = vmatpush3.bf16.msra.mxu0 %v2838_v46  ;;  %v2840_v46 = vld [vmem:[#allocation7 + $0x28] sm:$0xff]  }
 0x2f8   : > { %2647 = vmatprep.subr.bf16.mxu0 %v3200_v4 }
 0x2fb   : > { %2648 = vmatpush3.bf16.msra.mxu0 %v2839_v57 }
 0x2fc   : > { %2661 = vmatprep.subr.bf16.mxu0 %v3200_v4 }
 0x343   : > { %v839_v6 = vpop.f32.mrf.mxu0 }
 0x344   : > { %v847_v7 = vsel %vm846_vm2, %v839_v6, -inf }
 0x345   : > { %848 = vmax.xlane.f32.xlu1 %v847_v7  ;;  %v2625_v8 = vpop.f32.mrf.mxu0 }
 0x347   : > { %v842_v9 = vpop.f32.mrf.mxu0 }
 0x348   : > { %v850_v10 = vsel %vm846_vm2, %v842_v9, -inf }
 0x349   : > { %851 = vmax.xlane.f32.xlu0 %v850_v10  ;;  %v2626_v11 = vpop.f32.mrf.mxu0 }
 0x3b6   : > { %v961_v12 = vpop.f32.mrf.mxu0 }
 0x3b7   : > { %v968_v13 = vsel %vm846_vm2, %v961_v12, -inf }
 0x3b8   : > { %969 = vmax.xlane.f32.xlu0 %v968_v13  ;;  %v2637_v14 = vpop.f32.mrf.mxu0 }
 0x3ba   : > { %v964_v15 = vpop.f32.mrf.mxu0 }
 0x3bb   : > { %v971_v16 = vsel %vm846_vm2, %v964_v15, -inf }
 0x3bc   : > { %972 = vmax.xlane.f32.xlu1 %v971_v16  ;;  %v2638_v17 = vpop.f32.mrf.mxu0 }
 0x3ce   : > { %v849_v18 = vpop.xlane.xlu1 %848 }
 0x3cf   : > { %v853_v19 = vsub.f32 %v839_v6, %v849_v18 }
 0x3d1   : > { %v855_v20 = vmul.f32 1.442695, %v853_v19 }
 0x3d2   : > { %v852_v21 = vpop.xlane.xlu0 %851 }
 0x3d3   : > { %2928 = vpow2.f32 %v855_v20  ;;  %v854_v22 = vsub.f32 %v842_v9, %v852_v21 }
 0x3d5   : > { %v857_v23 = vmul.f32 1.442695, %v854_v22 }
 0x3d7   : > { %2930 = vpow2.f32 %v857_v23 }
 0x3e0   : > { %v2929_v24 = vpop.eup %2928 }
 0x3e1   : > { %v859_v25 = vsel %vm846_vm2, %v2929_v24, 0.0 }
 0x3e2   : > { %860 = vadd.xlane.f32.xlu0 %v859_v25 }
 0x3e4   : > { %v2931_v26 = vpop.eup %2930 }
 0x3e5   : > { %v862_v28 = vsel %vm846_vm2, %v2931_v26, 0.0 }
 0x3e6   : > { %863 = vadd.xlane.f32.xlu1 %v862_v28 }
 0x441   : > { %v970_v29 = vpop.xlane.xlu0 %969 }
 0x442   : > { %v974_v30 = vsub.f32 %v961_v12, %v970_v29 }
 0x444   : > { %v976_v31 = vmul.f32 1.442695, %v974_v30 }
 0x445   : > { %v973_v32 = vpop.xlane.xlu1 %972 }
 0x446   : > { %2932 = vpow2.f32 %v976_v31  ;;  %v975_v33 = vsub.f32 %v964_v15, %v973_v32 }
 0x448   : > { %v978_v34 = vmul.f32 1.442695, %v975_v33 }
 0x44a   : > { %2934 = vpow2.f32 %v978_v34 }
 0x453   : > { %v2933_v35 = vpop.eup %2932 }
 0x454   : > { %v980_v36 = vsel %vm846_vm2, %v2933_v35, 0.0 }
 0x455   : > { %981 = vadd.xlane.f32.xlu0 %v980_v36 }
 0x457   : > { %v2935_v37 = vpop.eup %2934 }
 0x458   : > { %v983_v38 = vsel %vm846_vm2, %v2935_v37, 0.0 }
 0x459   : > { %984 = vadd.xlane.f32.xlu1 %v983_v38 }
 0x46a   : > { %1154 = vrot.lane.b32.xlu1 %v3480_v63, %s3204_s19 }
 0x46b   : > { %992 = vrot.lane.b32.xlu0 %v3478_v60, %s3203_s14  ;;  %v861_v39 = vpop.xlane.xlu0 %860  ;;  %s489_s14 = scalar_lea.vmem [#allocation11], %s2393_s10  ;;  %s2258_s10 = scalar_lea.sflag [#allocation4], %s3417_s8 }
 0x46c   : > { %2936 = vrcp.f32 %v861_v39 }
 0x46e   : > { %1152 = vrot.lane.b32.xlu1 %v3476_v59, %s3204_s19 }
 0x46f   : > { %v864_v40 = vpop.xlane.xlu1 %863 }
 0x470   : > { %2938 = vrcp.f32 %v864_v40 }
 0x479   : > { %v2937_v41 = vpop.eup %2936 }
 0x47a   : > { %v867_v43 = vmul.f32 %v2937_v41, %v2929_v24 }
 0x47d   : > { %v2939_v42 = vpop.eup %2938 }
 0x47e   : > { %v868_v44 = vmul.f32 %v2939_v42, %v2931_v26 }
 0x480   : > { %v869_v45 = vpack.c.bf16 %v868_v44, %v867_v43 }
 0x482   : > { %2630 = vmatmul.mubr.msk.bf16.vlgmr.msra.gmra.mxu1 %vm846_vm2, %v869_v45 }
 0x483   : > { %2641 = vmatprep.mubr.msk.bf16.mxu1 %vm3202_vm0, %v3200_v4 }
 0x4de   : > { %v982_v47 = vpop.xlane.xlu0 %981 }
 0x4df   : > { %2940 = vrcp.f32 %v982_v47  ;;  %v2841_v47 = vld [vmem:[#allocation7 + $0x20] sm:$0xff]  }
 0x4e2   : > { %v993_v48 = vpop.permute.xlu0 %992  ;;  %v985_v49 = vpop.xlane.xlu1 %984 }
 0x4e3   : > { %2942 = vrcp.f32 %v985_v49  ;;  %2640 = vmatpush3.bf16.msra.mxu1 %v993_v48 }
 0x4e4   : > { %2653 = vmatprep.subr.bf16.mxu1 %v3200_v4 }
 0x4e6   : > { %v1155_v6 = vpop.permute.xlu1 %1154 }
 0x4e7   : > { %v1160_v10 = vsel %vm798_vm1, %v1155_v6, 0 }
 0x4ea   : > { %v1153_v11 = vpop.permute.xlu1 %1152 }
 0x4ec   : > { %v2941_v50 = vpop.eup %2940 }
 0x4ed   : > { %v988_v52 = vmul.f32 %v2941_v50, %v2933_v35 }
 0x4f0   : > { %v2943_v51 = vpop.eup %2942 }
 0x4f1   : > { %v989_v53 = vmul.f32 %v2943_v51, %v2935_v37 }
 0x4f3   : > { %v990_v55 = vpack.c.bf16 %v989_v53, %v988_v52 }
 0x4f5   : > { %2642 = vmatmul.mubr.msk.bf16.vlgmr.msra.gmra.mxu1 %vm846_vm2, %v990_v55 }
 0x4f6   : > { %2654 = vmatpush3.bf16.msra.mxu1 %v2836_v54  ;;  %2657 = vmatprep.mubr.msk.bf16.mxu1 %vm3202_vm0, %v3200_v4 }
 0x4f7   : > { %2655 = vmatprep.subr.bf16.mxu1 %v3200_v4 }
 0x4fa   : > { %2656 = vmatpush3.bf16.msra.mxu1 %v2837_v56 }
 0x4fb   : > { %2667 = vmatprep.subr.bf16.mxu1 %v3200_v4 }
 0x542   : > { %v907_v58 = vpop.f32.mrf.mxu1 }
 0x544   : > { %v2631_v61 = vpop.f32.mrf.mxu1 }
 0x546   : > { %v910_v62 = vpop.f32.mrf.mxu1 }
 0x547   : > { %v914_v1 = vpack.c.bf16 %v910_v62, %v907_v58 }
 0x548   : > { %v2632_v2 = vpop.f32.mrf.mxu1 }
 0x549   : > { %2658 = vmatmul.mubr.msk.bf16.vlgmr.msra.gmra.mxu1 %vm798_vm1, %v914_v1 }
 0x54a   : > { %2669 = vmatprep.mubr.msk.bf16.mxu1 %vm3202_vm0, %v3200_v4 }
 0x5b5   : > { %v1032_v3 = vpop.f32.mrf.mxu1 }
 0x5b7   : > { %v2643_v5 = vpop.f32.mrf.mxu1 }
 0x5b9   : > { %v1035_v7 = vpop.f32.mrf.mxu1 }
 0x5ba   : > { %v1039_v8 = vpack.c.bf16 %v1035_v7, %v1032_v3 }
 0x5bb   : > { %v2644_v9 = vpop.f32.mrf.mxu1 }
 0x5bc   : > { %2650 = vmatmul.mubr.msk.bf16.vlgmr.msra.gmra.mxu0 %vm798_vm1, %v1039_v8 }
 0x5bd   : > { %2662 = vmatpush3.bf16.xpose.msra.mxu0 %v1160_v10  ;;  %2663 = vmatprep.mubr.msk.bf16.mxu0 %vm3202_vm0, %v3200_v4 }
 0x5be   : > { %2673 = vmatprep.subr.bf16.mxu0 %v3200_v4 }
 0x5c4   : > { %2664 = vmatmul.mubr.msk.bf16.vlgmr.msra.gmra.mxu0 %vm798_vm1, %v1153_v11 }
 0x5c5   : > { %2677 = vmatprep.mubr.msk.bf16.mxu0 %vm3202_vm0, %v3200_v4  ;;  %2674 = vmatpush3.bf16.msra.mxu0 %v2840_v46 }
 0x5c6   : > { %2675 = vmatprep.subr.bf16.mxu0 %v3200_v4 }
 0x5c9   : > { %2676 = vmatpush3.bf16.msra.mxu0 %v2841_v47 }
 0x5ca   : > { %2687 = vmatprep.subr.bf16.mxu0 %v3200_v4 }
 0x609   : > { %v3536_v12 = vpop.f32.mrf.mxu1 }
 0x60b   : > { %v2659_v13 = vpop.f32.mrf.mxu1 }
 0x60d   : > { %v3538_v14 = vpop.f32.mrf.mxu1 }
 0x60f   : > { %v2660_v15 = vpop.f32.mrf.mxu1 }
 0x67c   : > { %v3540_v16 = vpop.f32.mrf.mxu0 }
 0x67d   : > { %v1146_v10 = vadd.f32 %v3536_v12, %v3540_v16  ;;  %v2842_v16 = vld [vmem:[#allocation7 + $0x38] sm:$0xff]  }
 0x67e   : > { %v2651_v17 = vpop.f32.mrf.mxu0 }
 0x680   : > { %v3542_v18 = vpop.f32.mrf.mxu0 }
 0x681   : > { %v1149_v17 = vadd.f32 %v3538_v14, %v3542_v18  ;;  %v2843_v14 = vld [vmem:[#allocation7 + $0x30] sm:$0xff]  }
 0x682   : > { %v2652_v19 = vpop.f32.mrf.mxu0 }
 0x684   : > { %v1196_v20 = vpop.f32.mrf.mxu0 }
 0x685   : > { %v1203_v21 = vsel %vm846_vm2, %v1196_v20, -inf }
 0x686   : > { %1204 = vmax.xlane.f32.xlu1 %v1203_v21  ;;  %v2665_v22 = vpop.f32.mrf.mxu0 }
 0x688   : > { %v1199_v23 = vpop.f32.mrf.mxu0 }
 0x689   : > { %v1206_v24 = vsel %vm846_vm2, %v1199_v23, -inf }
 0x68a   : > { %1207 = vmax.xlane.f32.xlu0 %v1206_v24  ;;  %v2666_v25 = vpop.f32.mrf.mxu0 }
 0x697   : > { %1226 = vrot.lane.b32.xlu1 %v3478_v60, %s3204_s19  ;;  %s2271_s19 = sshll.u32 %s489_s14, 4  ;;  %s3622_s19 = int_to_ptr.vmem [resolvable:$true] %s2271_s19 }
 0x698   : > { %s3113_s26 = scalar_lea.vmem %s3622_s19, 256 }
 0x699   : > { %p3114_p12 = scmp.ne.s32.totalorder %s3622_s19, %s3113_s26 }
 0x69b   : > { %1332 = vrot.lane.b32.xlu1 %v3476_v59, %s3205_s13  ;;  %p3115_p9 = pnand %p3114_p12, %p3713_p7 }
 0x69d   : > { %p3116_p13 = pneg %p3115_p9 }
 0x70f   : > { %v1205_v26 = vpop.xlane.xlu1 %1204 }
 0x710   : > { %v1209_v28 = vsub.f32 %v1196_v20, %v1205_v26 }
 0x712   : > { %v1211_v29 = vmul.f32 1.442695, %v1209_v28 }
 0x713   : > { %v1227_v30 = vpop.permute.xlu1 %1226  ;;  %v1208_v31 = vpop.xlane.xlu0 %1207 }
 0x714   : > { %2944 = vpow2.f32 %v1211_v29  ;;  %v1210_v32 = vsub.f32 %v1199_v23, %v1208_v31  ;;  %2668 = vmatpush3.bf16.msra.mxu1 %v1227_v30 }
 0x715   : > { %2681 = vmatprep.subr.bf16.mxu1 %v3200_v4 }
 0x716   : > { %v1213_v33 = vmul.f32 1.442695, %v1210_v32 }
 0x718   : > { %2946 = vpow2.f32 %v1213_v33 }
 0x721   : > { %v2945_v34 = vpop.eup %2944 }
 0x722   : > { %v1215_v35 = vsel %vm846_vm2, %v2945_v34, 0.0 }
 0x723   : > { %1216 = vadd.xlane.f32.xlu0 %v1215_v35 }
 0x725   : > { %v2947_v36 = vpop.eup %2946 }
 0x726   : > { %v1218_v37 = vsel %vm846_vm2, %v2947_v36, 0.0 }
 0x727   : > { %1219 = vadd.xlane.f32.xlu0 %v1218_v37 }
 0x73d   : > { %1334 = vrot.lane.b32.xlu0 %v3480_v63, %s3205_s13  ;;  %v1333_v63 = vpop.permute.xlu1 %1332 }
 0x7ac   : > { %v1217_v59 = vpop.xlane.xlu0 %1216 }
 0x7ad   : > { %2948 = vrcp.f32 %v1217_v59 }
 0x7b0   : > { %v1220_v38 = vpop.xlane.xlu0 %1219 }
 0x7b1   : > { %2950 = vrcp.f32 %v1220_v38 }
 0x7b4   : > { %v1335_v43 = vpop.permute.xlu0 %1334 }
 0x7b5   : > { %v1340_v45 = vsel %vm798_vm1, %v1335_v43, 0  ;;  %v2846_v43 = vld [vmem:[#allocation8 + $0xe4] ss:$16 sps:$4 sm:$0xff]  }
 0x7ba   : > { %v2949_v39 = vpop.eup %2948 }
 0x7bb   : > { %v1223_v41 = vmul.f32 %v2949_v39, %v2945_v34  ;;  %v2445_v34 = vld [vmem:[%s3676_s5] ss:$0 sm:$0xff] }
 0x7be   : > { %v2951_v40 = vpop.eup %2950 }
 0x7bf   : > { %v1224_v42 = vmul.f32 %v2951_v40, %v2947_v36 }
 0x7c1   : > { %v1225_v44 = vpack.c.bf16 %v1224_v42, %v1223_v41  ;;  %v2980_v41 = vld [vmem:[%s3423_s30 + $0x8] sm:$0xff] }
 0x7c3   : > { %2670 = vmatmul.mubr.msk.bf16.vlgmr.msra.gmra.mxu1 %vm846_vm2, %v1225_v44  ;;  %v2847_v44 = vld [vmem:[#allocation8 + $0xe8] ss:$16 sps:$4 sm:$0xff]  }
 0x7c4   : > { %2682 = vmatpush3.bf16.xpose.msra.mxu1 %v1340_v45  ;;  %2683 = vmatprep.mubr.msk.bf16.mxu1 %vm3202_vm0, %v3200_v4  ;;  %v2849_v45 = vld [vmem:[#allocation8 + $0xec] ss:$16 sps:$4 sm:$0xff]  }
 0x7c5   : > { %2693 = vmatprep.subr.bf16.mxu1 %v3200_v4 }
 0x7cb   : > { %2684 = vmatmul.mubr.msk.bf16.vlgmr.msra.gmra.mxu1 %vm798_vm1, %v1333_v63 }
 0x7cc   : > { %2697 = vmatprep.mubr.msk.bf16.mxu1 %vm3202_vm0, %v3200_v4  ;;  %2694 = vmatpush3.bf16.msra.mxu1 %v2842_v16 }
 0x7cd   : > { %2695 = vmatprep.subr.bf16.mxu1 %v3200_v4 }
 0x7d0   : > { %2696 = vmatpush3.bf16.msra.mxu1 %v2843_v14 }
 0x7d1   : > { %1821 = vmatprep.subr.bf16.mxu1 %v2849_v45  ;;  %v2900_v45 = vld [vmem:[#allocation10 + $0x68] sm:$0xff]  }
 0x883   : > { %v1266_v48 = vpop.f32.mrf.mxu1 }
 0x885   : > { %v2671_v49 = vpop.f32.mrf.mxu1 }
 0x887   : > { %v1269_v50 = vpop.f32.mrf.mxu1 }
 0x888   : > { %v1273_v51 = vpack.c.bf16 %v1269_v50, %v1266_v48 }
 0x889   : > { %v2672_v52 = vpop.f32.mrf.mxu1 }
 0x88a   : > { %2678 = vmatmul.mubr.msk.bf16.vlgmr.msra.gmra.mxu0 %vm798_vm1, %v1273_v51  ;;  %v2852_v52 = vld [vmem:[#allocation8 + $0xc4] ss:$16 sps:$4 sm:$0xff]  }
 0x88b   : > { %v1376_v53 = vpop.f32.mrf.mxu1  ;;  %2689 = vmatprep.mubr.msk.bf16.mxu0 %vm3202_vm0, %v3200_v4 }
 0x88c   : > { %v1383_v54 = vsel %vm846_vm2, %v1376_v53, -inf }
 0x88d   : > { %1384 = vmax.xlane.f32.xlu1 %v1383_v54  ;;  %v2685_v55 = vpop.f32.mrf.mxu1  ;;  %v2850_v54 = vld [vmem:[#allocation8 + $0xc0] ss:$16 sps:$4 sm:$0xff]  }
 0x88e   : > { %v2853_v55 = vld [vmem:[#allocation8 + $0xc8] ss:$16 sps:$4 sm:$0xff]  }
 0x88f   : > { %v1379_v56 = vpop.f32.mrf.mxu1 }
 0x890   : > { %v1386_v57 = vsel %vm846_vm2, %v1379_v56, -inf }
 0x891   : > { %1387 = vmax.xlane.f32.xlu0 %v1386_v57  ;;  %v2686_v58 = vpop.f32.mrf.mxu1  ;;  %v2861_v57 = vld [vmem:[#allocation8 + $0xac] ss:$16 sps:$4 sm:$0xff]  }
 0x892   : > { %v2856_v58 = vld [vmem:[#allocation8 + $0xa0] ss:$16 sps:$4 sm:$0xff]  }
 0x916   : > { %v1385_v61 = vpop.xlane.xlu1 %1384 }
 0x917   : > { %v1389_v62 = vsub.f32 %v1376_v53, %v1385_v61  ;;  %v2855_v53 = vld [vmem:[#allocation8 + $0xcc] ss:$16 sps:$4 sm:$0xff]   ;;  %v2859_v61 = vld [vmem:[#allocation8 + $0xa8] ss:$16 sps:$4 sm:$0xff]  }
 0x919   : > { %v1391_v1 = vmul.f32 1.442695, %v1389_v62  ;;  %v2862_v62 = vld [vmem:[#allocation8 + $0x80] ss:$16 sps:$4 sm:$0xff]  }
 0x91a   : > { %v1388_v2 = vpop.xlane.xlu0 %1387 }
 0x91b   : > { %2952 = vpow2.f32 %v1391_v1  ;;  %v1390_v3 = vsub.f32 %v1379_v56, %v1388_v2  ;;  %v2858_v56 = vld [vmem:[#allocation8 + $0xa4] ss:$16 sps:$4 sm:$0xff]   ;;  %v2865_v2 = vld [vmem:[#allocation8 + $0x88] ss:$16 sps:$4 sm:$0xff]  }
 0x91c   : > { %v2864_v1 = vld [vmem:[#allocation8 + $0x84] ss:$16 sps:$4 sm:$0xff]  }
 0x91d   : > { %v1393_v5 = vmul.f32 1.442695, %v1390_v3  ;;  %v2867_v3 = vld [vmem:[#allocation8 + $0x8c] ss:$16 sps:$4 sm:$0xff]  }
 0x91f   : > { %2954 = vpow2.f32 %v1393_v5  ;;  %v2870_v5 = vld [vmem:[#allocation8 + $0x64] ss:$16 sps:$4 sm:$0xff]  }
 0x928   : > { %v2953_v6 = vpop.eup %2952 }
 0x929   : > { %v1395_v7 = vsel %vm846_vm2, %v2953_v6, 0.0 }
 0x92a   : > { %1396 = vadd.xlane.f32.xlu0 %v1395_v7  ;;  %v2868_v7 = vld [vmem:[#allocation8 + $0x60] ss:$16 sps:$4 sm:$0xff]  }
 0x92c   : > { %v2955_v8 = vpop.eup %2954 }
 0x92d   : > { %v1398_v9 = vsel %vm846_vm2, %v2955_v8, 0.0 }
 0x92e   : > { %1399 = vadd.xlane.f32.xlu1 %v1398_v9  ;;  %v2876_v9 = vld [vmem:[#allocation8 + $0x44] ss:$16 sps:$4 sm:$0xff]  }
 0x940   : > { %1406 = vrot.lane.b32.xlu0 %v3478_v60, %s3205_s13  ;;  %s2519_s13 = sshll.u32 %s3295_s25, 8  ;;  %s3206_s25 = smov [#allocation11]  }
 0x941   : > { %s3627_s4 = scalar_lea.hbm %s3683_s12, %s2519_s13  ;;  %s3117_s15 = sshll.u32 %s3206_s25, 4  ;;  %s3118_s15 = int_to_ptr.vmem [resolvable:$false] %s3117_s15 }
 0x942   : > { %s3119_s30 = scalar_lea.vmem %s3118_s15, 512  ;;  %p3120_p5 = scmp.lt.s32.totalorder %s3622_s19, %s3118_s15 }
 0x943   : > { %p3121_p10 = scmp.lt.s32.totalorder %s3119_s30, %s3113_s26 }
 0x945   : > { %p3122_p1 = por %p3121_p10, %p3120_p5 }
 0x947   : > { %p3123_p2 = pnand %p3122_p1, %p3116_p13 }
 0x94a   : > { %v1323_v11 = vpop.f32.mrf.mxu0 }
 0x94b   : > { %v1330_v13 = vadd.f32 %v1323_v11, %v1146_v10  ;;  %v2879_v10 = vld [vmem:[#allocation8 + $0x4c] ss:$16 sps:$4 sm:$0xff]   ;;  %v2874_v11 = vld [vmem:[#allocation8 + $0x40] ss:$16 sps:$4 sm:$0xff]  }
 0x94c   : > { %v2679_v15 = vpop.f32.mrf.mxu0 }
 0x94d   : > { %v2882_v15 = vld [vmem:[#allocation8 + $0x24] ss:$16 sps:$4 sm:$0xff]  }
 0x94e   : > { %v1326_v19 = vpop.f32.mrf.mxu0 }
 0x94f   : > { %v1331_v20 = vadd.f32 %v1326_v19, %v1149_v17  ;;  %v2885_v17 = vld [vmem:[#allocation8 + $0x2c] ss:$16 sps:$4 sm:$0xff]   ;;  %v2880_v19 = vld [vmem:[#allocation8 + $0x20] ss:$16 sps:$4 sm:$0xff]  }
 0x950   : > { %v2680_v21 = vpop.f32.mrf.mxu0 }
 0x951   : > { %v2888_v21 = vld [vmem:[#allocation8 + $0x4] ss:$16 sps:$4 sm:$0xff]  }
 0x9b3   : > { %v1397_v22 = vpop.xlane.xlu0 %1396 }
 0x9b4   : > { %2956 = vrcp.f32 %v1397_v22  ;;  %v2891_v22 = vld [vmem:[#allocation8 + $0xc] ss:$16 sps:$4 sm:$0xff]  }
 0x9b7   : > { %v1400_v23 = vpop.xlane.xlu1 %1399  ;;  %v1407_v24 = vpop.permute.xlu0 %1406 }
 0x9b8   : > { %2958 = vrcp.f32 %v1400_v23  ;;  %2688 = vmatpush3.bf16.msra.mxu0 %v1407_v24  ;;  %v2886_v23 = vld [vmem:[#allocation8] ss:$16 sps:$4 sm:$0xff]   ;;  %v2889_v24 = vld [vmem:[#allocation8 + $0x8] ss:$16 sps:$4 sm:$0xff]  }
 0x9b9   : > { %1778 = vmatprep.subr.bf16.mxu0 %v2846_v43  ;;  %v2898_v43 = vld [vmem:[#allocation10 + $0x30] sm:$0xff]  }
 0x9c1   : > { %v2957_v25 = vpop.eup %2956 }
 0x9c2   : > { %v1403_v26 = vmul.f32 %v2957_v25, %v2953_v6  ;;  %v2873_v6 = vld [vmem:[#allocation8 + $0x6c] ss:$16 sps:$4 sm:$0xff]  }
 0x9c5   : > { %v2959_v60 = vpop.eup %2958 }
 0x9c6   : > { %v1404_v28 = vmul.f32 %v2959_v60, %v2955_v8  ;;  %v2871_v8 = vld [vmem:[#allocation8 + $0x68] ss:$16 sps:$4 sm:$0xff]  }
 0x9c8   : > { %v1405_v12 = vpack.c.bf16 %v1404_v28, %v1403_v26 }
 0x9ca   : > { %2690 = vmatmul.mubr.msk.bf16.vlgmr.msra.gmra.mxu0 %vm846_vm2, %v1405_v12 }
 0x9cb   : > { %1810 = vmatprep.mubr.bf16.mxu0 %v3201_v27 }
 0xa8a   : > { %v1446_v18 = vpop.f32.mrf.mxu0 }
 0xa8c   : > { %v2691_v29 = vpop.f32.mrf.mxu0 }
 0xa8d   : > { %v2446_v29 = vld [vmem:[%s3677_s6] ss:$0 sm:$0xff] }
 0xa8e   : > { %v1449_v30 = vpop.f32.mrf.mxu0 }
 0xa8f   : > { %v1453_v31 = vpack.c.bf16 %v1449_v30, %v1446_v18 }
 0xa90   : > { %v2692_v32 = vpop.f32.mrf.mxu0 }
 0xa91   : > { %2698 = vmatmul.mubr.msk.bf16.vlgmr.msra.gmra.mxu1 %vm798_vm1, %v1453_v31 }
 0xa92   : > { %1853 = vmatprep.mubr.bf16.mxu1 %v3201_v27  ;;  %v2844_v27 = vld [vmem:[#allocation8 + $0xe0] ss:$16 sps:$4 sm:$0xff]   ;;  %1822 = vmatpush1.bf16.msra.mxu1 %v2847_v44 }
 0xa93   : > { %1779 = vmatpush1.bf16.msra.mxu0 %v2844_v27  ;;  %1823 = vmatprep.subr.bf16.mxu1 %v2855_v53  ;;  %v2897_v27 = vld [vmem:[#allocation10 + $0xf0] sm:$0xff]   ;;  %v2910_v53 = vld [vmem:[#allocation10 + $0x18] sm:$0xff]  }
 0xa94   : > { %1780 = vmatprep.subr.bf16.mxu0 %v2852_v52  ;;  %v2899_v44 = vld [vmem:[#allocation10 + $0xb0] sm:$0xff]   ;;  %v2909_v52 = vld [vmem:[#allocation10 + $0xd8] sm:$0xff]  }
 0xa96   : > { %1824 = vmatpush1.bf16.msra.mxu1 %v2853_v55  ;;  %v2912_v55 = vld [vmem:[#allocation10 + $0x50] sm:$0xff]  }
 0xa97   : > { %1781 = vmatpush1.bf16.msra.mxu0 %v2850_v54  ;;  %1825 = vmatprep.subr.bf16.mxu1 %v2861_v57  ;;  %v2911_v54 = vld [vmem:[#allocation10 + $0x98] sm:$0xff]   ;;  %v2914_v57 = vld [vmem:[#allocation10 + $0x10] sm:$0xff]  }
 0xa98   : > { %1782 = vmatprep.subr.bf16.mxu0 %v2858_v56  ;;  %v2913_v56 = vld [vmem:[#allocation10 + $0xd0] sm:$0xff]  }
 0xa9a   : > { %1826 = vmatpush1.bf16.msra.mxu1 %v2859_v61  ;;  %v2916_v61 = vld [vmem:[#allocation10 + $0x48] sm:$0xff]  }
 0xa9b   : > { %1783 = vmatpush1.bf16.msra.mxu0 %v2856_v58  ;;  %1827 = vmatprep.subr.bf16.mxu1 %v2867_v3  ;;  %v2915_v58 = vld [vmem:[#allocation10 + $0x90] sm:$0xff]   ;;  %v2920_v3 = vld [vmem:[#allocation10 + $0x40] sm:$0xff]  }
 0xa9c   : > { %1784 = vmatprep.subr.bf16.mxu0 %v2864_v1  ;;  %v2918_v1 = vld [vmem:[#allocation10 + $0x8] sm:$0xff]  }
 0xa9e   : > { %1828 = vmatpush1.bf16.msra.mxu1 %v2865_v2  ;;  %v2919_v2 = vld [vmem:[#allocation10 + $0x88] sm:$0xff]  }
 0xa9f   : > { %1785 = vmatpush1.bf16.msra.mxu0 %v2862_v62  ;;  %1829 = vmatprep.subr.bf16.mxu1 %v2873_v6  ;;  %v2917_v62 = vld [vmem:[#allocation10 + $0xc8] sm:$0xff]   ;;  %v2922_v6 = vld [vmem:[#allocation10] sm:$0xff]  }
 0xaa0   : > { %1786 = vmatprep.subr.bf16.mxu0 %v2870_v5  ;;  %v2921_v5 = vld [vmem:[#allocation10 + $0xc0] sm:$0xff]  }
 0xaa2   : > { %1830 = vmatpush1.bf16.msra.mxu1 %v2871_v8  ;;  %v1598_v8 = vlaneseq }
 0xaa3   : > { %1787 = vmatpush1.bf16.msra.mxu0 %v2868_v7  ;;  %1831 = vmatprep.subr.bf16.mxu1 %v2879_v10  ;;  %v2923_v7 = vld [vmem:[#allocation10 + $0x80] sm:$0xff]  }
 0xaa4   : > { %1788 = vmatprep.subr.bf16.mxu0 %v2876_v9  ;;  %v1599_v9 = vshrl.u32 %v1598_v8, 7 }
 0xaa6   : > { %v1600_v10 = vsub.s32 0, %v1599_v9 }
 0xaa7   : > { %1789 = vmatpush1.bf16.msra.mxu0 %v2874_v11  ;;  %v1608_v11 = vsub.s32 2, %v1599_v9 }
 0xaa8   : > { %1790 = vmatprep.subr.bf16.mxu0 %v2882_v15  ;;  %v1604_v15 = vsub.s32 1, %v1599_v9 }
 0xaab   : > { %1791 = vmatpush1.bf16.msra.mxu0 %v2880_v19 }
 0xaac   : > { %1792 = vmatprep.subr.bf16.mxu0 %v2888_v21 }
 0xaaf   : > { %1793 = vmatpush1.bf16.msra.mxu0 %v2886_v23 }
 0xb51   : > { %v1503_v33 = vpop.f32.mrf.mxu1 }
 0xb52   : > { %v1510_v35 = vadd.f32 %v1503_v33, %v1330_v13  ;;  %v2877_v13 = vld [vmem:[#allocation8 + $0x48] ss:$16 sps:$4 sm:$0xff]   ;;  %v2447_v33 = vld [vmem:[%s3678_s7] ss:$0 sm:$0xff] }
 0xb53   : > { %v2699_v36 = vpop.f32.mrf.mxu1  ;;  %1832 = vmatpush1.bf16.msra.mxu1 %v2877_v13  ;;  %v1596_v13 = vld [vmem:[%s3680_s9] sm:$0xf] }
 0xb54   : > { %v1519_v4 = vadd.f32 %v2445_v34, %v1510_v35  ;;  %1833 = vmatprep.subr.bf16.mxu1 %v2885_v17  ;;  %v1612_v17 = vsub.s32 3, %v1599_v9  ;;  %v1601_v19 = vrot.slane %v1596_v13, %v1600_v10  ;;  %v1605_v23 = vrot.slane %v1596_v13, %v1604_v15 }
 0xb55   : > { %v1506_v37 = vpop.f32.mrf.mxu1 }
 0xb56   : > { %v1511_v59 = vadd.f32 %v1506_v37, %v1331_v20  ;;  %v3587_v38 = vadd.f32 %v1519_v4, %v3438_v0  ;;  %v2883_v20 = vld [vmem:[#allocation8 + $0x28] ss:$16 sps:$4 sm:$0xff]  }
 0xb57   : > { %v2700_v39 = vpop.f32.mrf.mxu1  ;;  %1834 = vmatpush1.bf16.msra.mxu1 %v2883_v20  ;;  %v2892_v37 = vld [vmem:[#allocation10 + $0x78] sm:$0xff]   ;;  %v1609_v20 = vrot.slane %v1596_v13, %v1608_v11 }
 0xb58   : > { %v1520_v40 = vadd.f32 %v2445_v34, %v1511_v59  ;;  %1525 = vadd.xlane.f32.xlu1 %v3587_v38  ;;  %1835 = vmatprep.subr.bf16.mxu1 %v2891_v22  ;;  %v2893_v59 = vld [vmem:[#allocation10 + $0xf8] sm:$0xff]  }
 0xb59   : > { %v2894_v39 = vld [vmem:[#allocation10 + $0x38] sm:$0xff]   ;;  %2557 = vmatprep.subr.bf16.mxu0 %v2892_v37 }
 0xb5a   : > { %v3591_v42 = vadd.f32 %v2980_v41, %v1520_v40  ;;  %v2895_v40 = vld [vmem:[#allocation10 + $0xb8] sm:$0xff]   ;;  %v2896_v41 = vld [vmem:[#allocation10 + $0x70] sm:$0xff]  }
 0xb5b   : > { %1836 = vmatpush1.bf16.msra.mxu1 %v2889_v24  ;;  %v1613_v24 = vrot.slane %v1596_v13, %v1612_v17 }
 0xb5c   : > { %1527 = vadd.xlane.f32.xlu1 %v3591_v42  ;;  %2579 = vmatprep.subr.bf16.mxu1 %v2893_v59 }
 0xbe1   : > { %v1526_v63 = vpop.xlane.xlu1 %1525 }
 0xbe2   : > { %v1529_v0 = vmul.f32 0.0078125, %v1526_v63  ;;  %v2901_v63 = vld [vmem:[#allocation10 + $0xe8] sm:$0xff]  }
 0xbe4   : > { %v3595_v46 = vsub.f32 %v3587_v38, %v1529_v0  ;;  %v2902_v0 = vld [vmem:[#allocation10 + $0x28] sm:$0xff]  }
 0xbe5   : > { %v1528_v47 = vpop.xlane.xlu1 %1527 }
 0xbe6   : > { %v1530_v48 = vmul.f32 0.0078125, %v1528_v47  ;;  %v1533_v49 = vmul.f32 %v3595_v46, %v3595_v46  ;;  %v2904_v47 = vld [vmem:[#allocation10 + $0x60] sm:$0xff]  }
 0xbe8   : > { %v3600_v50 = vsub.f32 %v3591_v42, %v1530_v48  ;;  %1535 = vadd.xlane.f32.xlu1 %v1533_v49  ;;  %v2905_v48 = vld [vmem:[#allocation10 + $0xe0] sm:$0xff]  }
 0xbe9   : > { %v2906_v49 = vld [vmem:[#allocation10 + $0x20] sm:$0xff]  }
 0xbea   : > { %v1534_v51 = vmul.f32 %v3600_v50, %v3600_v50 }
 0xbec   : > { %1537 = vadd.xlane.f32.xlu1 %v1534_v51  ;;  %v2908_v51 = vld [vmem:[#allocation10 + $0x58] sm:$0xff]  }
 0xc71   : > { %v1536_v25 = vpop.xlane.xlu1 %1535 }
 0xc72   : > { %v1539_v60 = vmul.f32 0.0078125, %v1536_v25 }
 0xc74   : > { %v1541_v26 = vadd.f32 1e-05, %v1539_v60 }
 0xc75   : > { %v1538_v28 = vpop.xlane.xlu1 %1537 }
 0xc76   : > { %2960 = vrsqrt.f32 %v1541_v26  ;;  %v1540_v12 = vmul.f32 0.0078125, %v1538_v28 }
 0xc78   : > { %v1542_v16 = vadd.f32 1e-05, %v1540_v12 }
 0xc7a   : > { %2962 = vrsqrt.f32 %v1542_v16 }
 0xc83   : > { %v2961_v14 = vpop.eup %2960 }
 0xc84   : > { %v1545_v18 = vmul.f32 %v2961_v14, %v3595_v46  ;;  %v2903_v46 = vld [vmem:[#allocation10 + $0xa8] sm:$0xff]  }
 0xc86   : > { %v1553_v32 = vmul.f32 %v2446_v29, %v1545_v18 }
 0xc87   : > { %v2963_v30 = vpop.eup %2962 }
 0xc88   : > { %v1546_v31 = vmul.f32 %v2963_v30, %v3600_v50  ;;  %v1561_v35 = vadd.f32 %v2447_v33, %v1553_v32  ;;  %v2907_v50 = vld [vmem:[#allocation10 + $0xa0] sm:$0xff]  }
 0xc8a   : > { %v1554_v34 = vmul.f32 %v2446_v29, %v1546_v31 }
 0xc8c   : > { %v1562_v36 = vadd.f32 %v2447_v33, %v1554_v34 }
 0xc8e   : > { %v1563_v4 = vpack.c.bf16 %v1562_v36, %v1561_v35 }
 0xc90   : > { %1811 = vmatmul.mubr.bf16.vlgmr.msra.gmra.mxu0 %v1563_v4  ;;  %1854 = vmatmul.mubr.bf16.vlgmr.msra.gmra.mxu1 %v1563_v4 }
 0xc91   : > { %2558 = vmatpush3.bf16.msra.mxu0 %v2894_v39  ;;  %2580 = vmatpush3.bf16.msra.mxu1 %v2895_v40 }
 0xc92   : > { %2559 = vmatprep.subr.bf16.mxu0 %v2896_v41  ;;  %2581 = vmatprep.subr.bf16.mxu1 %v2897_v27 }
 0xc95   : > { %2560 = vmatpush3.bf16.msra.mxu0 %v2898_v43  ;;  %2582 = vmatpush3.bf16.msra.mxu1 %v2899_v44 }
 0xc96   : > { %2561 = vmatprep.subr.bf16.mxu0 %v2900_v45  ;;  %2583 = vmatprep.subr.bf16.mxu1 %v2901_v63 }
 0xc99   : > { %2562 = vmatpush3.bf16.msra.mxu0 %v2902_v0  ;;  %2584 = vmatpush3.bf16.msra.mxu1 %v2903_v46 }
 0xc9a   : > { %2563 = vmatprep.subr.bf16.mxu0 %v2904_v47  ;;  %2585 = vmatprep.subr.bf16.mxu1 %v2905_v48 }
 0xc9d   : > { %2564 = vmatpush3.bf16.msra.mxu0 %v2906_v49  ;;  %2586 = vmatpush3.bf16.msra.mxu1 %v2907_v50 }
 0xc9e   : > { %2565 = vmatprep.subr.bf16.mxu0 %v2908_v51  ;;  %2587 = vmatprep.subr.bf16.mxu1 %v2909_v52 }
 0xca1   : > { %2566 = vmatpush3.bf16.msra.mxu0 %v2910_v53  ;;  %2588 = vmatpush3.bf16.msra.mxu1 %v2911_v54 }
 0xca2   : > { %2567 = vmatprep.subr.bf16.mxu0 %v2912_v55  ;;  %2589 = vmatprep.subr.bf16.mxu1 %v2913_v56 }
 0xca5   : > { %2568 = vmatpush3.bf16.msra.mxu0 %v2914_v57  ;;  %2590 = vmatpush3.bf16.msra.mxu1 %v2915_v58 }
 0xca6   : > { %2569 = vmatprep.subr.bf16.mxu0 %v2916_v61  ;;  %2591 = vmatprep.subr.bf16.mxu1 %v2917_v62 }
 0xca9   : > { %2570 = vmatpush3.bf16.msra.mxu0 %v2918_v1  ;;  %2592 = vmatpush3.bf16.msra.mxu1 %v2919_v2 }
 0xcaa   : > { %2571 = vmatprep.subr.bf16.mxu0 %v2920_v3  ;;  %2593 = vmatprep.subr.bf16.mxu1 %v2921_v5 }
 0xcad   : > { %2572 = vmatpush3.bf16.msra.mxu0 %v2922_v6  ;;  %2594 = vmatpush3.bf16.msra.mxu1 %v2923_v7 }
 0xd50   : > { %v1812_v21 = vpop.f32.mrf.mxu0  ;;  %v1855_v22 = vpop.f32.mrf.mxu1 }
 0xd51   : > { %v1813_v25 = vadd.f32 %v1812_v21, %v1601_v19  ;;  %v1856_v60 = vadd.f32 %v1855_v22, %v1609_v20 }
 0xd52   : > { %v1814_v26 = vpop.f32.mrf.mxu0  ;;  %v1857_v28 = vpop.f32.mrf.mxu1 }
 0xd53   : > { %v1872_v12 = vmul.f32 0.70710677, %v1813_v25  ;;  %v1874_v16 = vmul.f32 0.70710677, %v1856_v60  ;;  %v1815_v14 = vadd.f32 %v1814_v26, %v1605_v23  ;;  %v1858_v18 = vadd.f32 %v1857_v28, %v1613_v24 }
 0xd54   : > { %v1816_v29 = vpop.f32.mrf.mxu0  ;;  %v1859_v30 = vpop.f32.mrf.mxu1  ;;  %v1864_v46 = vmul.f32 0.5, %v1813_v25  ;;  %v1866_v5 = vmul.f32 0.5, %v1856_v60 }
 0xd55   : > { %v1817_v31 = vadd.f32 %v1816_v29, %v1601_v19  ;;  %v1860_v32 = vadd.f32 %v1859_v30, %v1609_v20  ;;  %2964 = verf.f32 %v1872_v12  ;;  %v1873_v33 = vmul.f32 0.70710677, %v1815_v14 }
 0xd56   : > { %v1818_v34 = vpop.f32.mrf.mxu0  ;;  %v1861_v35 = vpop.f32.mrf.mxu1  ;;  %2966 = verf.f32 %v1874_v16  ;;  %v1875_v36 = vmul.f32 0.70710677, %v1858_v18  ;;  %v1865_v47 = vmul.f32 0.5, %v1815_v14  ;;  %v1867_v62 = vmul.f32 0.5, %v1858_v18 }
 0xd57   : > { %v1876_v4 = vmul.f32 0.70710677, %v1817_v31  ;;  %2968 = verf.f32 %v1873_v33  ;;  %v1878_v37 = vmul.f32 0.70710677, %v1860_v32  ;;  %v1819_v59 = vadd.f32 %v1818_v34, %v1605_v23  ;;  %v2480_v23 = vld [vmem:[%s3682_s11] ss:$0 sm:$0xff] }
 0xd58   : > { %v1862_v39 = vadd.f32 %v1861_v35, %v1613_v24  ;;  %2970 = verf.f32 %v1875_v36  ;;  %v1868_v53 = vmul.f32 0.5, %v1817_v31  ;;  %v1870_v57 = vmul.f32 0.5, %v1860_v32 }
 0xd59   : > { %2972 = verf.f32 %v1876_v4  ;;  %v1877_v40 = vmul.f32 0.70710677, %v1819_v59  ;;  %v1869_v58 = vmul.f32 0.5, %v1819_v59 }
 0xd5a   : > { %2974 = verf.f32 %v1878_v37  ;;  %v1879_v41 = vmul.f32 0.70710677, %v1862_v39  ;;  %v1871_v2 = vmul.f32 0.5, %v1862_v39 }
 0xd5b   : > { %2976 = verf.f32 %v1877_v40 }
 0xd5c   : > { %2978 = verf.f32 %v1879_v41 }
 0xd62   : > { %v2965_v27 = vpop.eup %2964 }
 0xd63   : > { %v2967_v43 = vpop.eup %2966  ;;  %v1888_v51 = vadd.f32 1.0, %v2965_v27 }
 0xd64   : > { %v2969_v44 = vpop.eup %2968  ;;  %v1890_v56 = vadd.f32 1.0, %v2967_v43 }
 0xd65   : > { %v2971_v45 = vpop.eup %2970  ;;  %v1889_v48 = vadd.f32 1.0, %v2969_v44  ;;  %v1896_v9 = vmul.f32 %v1888_v51, %v1864_v46 }
 0xd66   : > { %v2973_v63 = vpop.eup %2972  ;;  %v1891_v52 = vadd.f32 1.0, %v2971_v45  ;;  %v1898_v13 = vmul.f32 %v1890_v56, %v1866_v5 }
 0xd67   : > { %v2975_v0 = vpop.eup %2974  ;;  %v1892_v49 = vadd.f32 1.0, %v2973_v63  ;;  %v1897_v6 = vmul.f32 %v1889_v48, %v1865_v47 }
 0xd68   : > { %v2977_v50 = vpop.eup %2976  ;;  %v1894_v54 = vadd.f32 1.0, %v2975_v0  ;;  %v1899_v10 = vmul.f32 %v1891_v52, %v1867_v62 }
 0xd69   : > { %v2979_v55 = vpop.eup %2978  ;;  %v1893_v61 = vadd.f32 1.0, %v2977_v50  ;;  %v1900_v1 = vmul.f32 %v1892_v49, %v1868_v53 }
 0xd6a   : > { %v1895_v3 = vadd.f32 1.0, %v2979_v55  ;;  %v1902_v7 = vmul.f32 %v1894_v54, %v1870_v57 }
 0xd6b   : > { %v1901_v8 = vmul.f32 %v1893_v61, %v1869_v58  ;;  %v1904_v17 = vpack.c.bf16 %v1900_v1, %v1896_v9 }
 0xd6c   : > { %v1903_v11 = vmul.f32 %v1895_v3, %v1871_v2  ;;  %v1906_v20 = vpack.c.bf16 %v1902_v7, %v1898_v13 }
 0xd6d   : > { %v1905_v15 = vpack.c.bf16 %v1901_v8, %v1897_v6 }
 0xd6e   : > { %v1907_v19 = vpack.c.bf16 %v1903_v11, %v1899_v10 }
 0xd6f   : > { %2203 = vmatprep.mubr.bf16.mxu0 %v1905_v15 }
 0xd70   : > { %2244 = vmatprep.mubr.bf16.mxu1 %v1907_v19  ;;  %2204 = vmatmul.mubr.bf16.vlgmr.msra.gmra.mxu0 %v1904_v17 }
 0xd71   : > { %2245 = vmatmul.mubr.bf16.vlgmr.msra.gmra.mxu1 %v1906_v20 }
 0xe30   : > { %v2573_v21 = vpop.f32.mrf.mxu0 }
 0xe31   : > { %v2595_v22 = vpop.f32.mrf.mxu1 }
 0xe32   : > { %v2574_v24 = vpop.f32.mrf.mxu0 }
 0xe33   : > { %v2575_v25 = vadd.f32 %v2574_v24, %v2573_v21  ;;  %v2596_v60 = vpop.f32.mrf.mxu1 }
 0xe34   : > { %v2576_v26 = vpop.f32.mrf.mxu0  ;;  %v2597_v12 = vadd.f32 %v2596_v60, %v2595_v22 }
 0xe35   : > { %v2206_v28 = vadd.f32 %v2575_v25, %v2480_v23  ;;  %v2598_v16 = vpop.f32.mrf.mxu1 }
 0xe36   : > { %v2577_v14 = vpop.f32.mrf.mxu0 }
 0xe37   : > { %v2247_v18 = vadd.f32 %v2597_v12, %v2206_v28  ;;  %v2578_v29 = vadd.f32 %v2577_v14, %v2576_v26  ;;  %v2599_v30 = vpop.f32.mrf.mxu1 }
 0xe38   : > { %v2600_v33 = vadd.f32 %v2599_v30, %v2598_v16 }
 0xe39   : > { %v2253_v31 = vadd.f32 %v2247_v18, %v3587_v38  ;;  %v2209_v32 = vadd.f32 %v2578_v29, %v2480_v23 }
 0xe3b   : > { %2255 = vst [vmem:[%s489_s14] sm:$0xff] %v2253_v31  ;;  %v2250_v34 = vadd.f32 %v2600_v33, %v2209_v32 }
 0xe3d   : > { %v2254_v35 = vadd.f32 %v2250_v34, %v3591_v42 }
 0xe3f   : > { %2256 = vst [vmem:[%s489_s14 + $0x8] sm:$0xff] %v2254_v35 }
 0xe40   : > { %3126 = shalt.err (!%p3123_p2)
}
 0xe41   : > { %s3127_s3 = scalar_lea.hbm %s3627_s4, 256  ;;  %s3131_s17 = scalar_lea.hbm %s3683_s12, 512 }
 0xe42   : > { %p3128_p3 = scmp.ne.s32.totalorder %s3627_s4, %s3127_s3  ;;  %p3132_p0 = scmp.lt.s32.totalorder %s3627_s4, %s3683_s12 }
 0xe43   : > { %p3133_p11 = scmp.lt.s32.totalorder %s3131_s17, %s3127_s3 }
 0xe44   : > { %p3129_p4 = pnand %p3128_p3, %p3713_p7 }
 0xe45   : > { %p3134_p6 = por %p3133_p11, %p3132_p0 }
 0xe46   : > { %p3130_p8 = pneg %p3129_p4 }
 0xe48   : > { %p3135_p12 = pnand %p3134_p6, %p3130_p8 }
 0xe4a   : > { %3138 = shalt.err (!%p3135_p12)
}
 0xe4b   : > { %s3207_s16 = smov 128   ;;  %s3208_s20 = smov 8  }
 0xe4c   : > { %2719 = dma.vmem_to_hbm [thread:$0]  (%p3713_p7), %s3622_s19, 256, %s3627_s4, %s2258_s10, %s3207_s16, %s3207_s16, %s3208_s20  }
 0xe4d PF: > { %s3714_s26 = sld [smem:[#allocation16_spill]]  ;;  %p3717_p13 = scmp.ge.s32.totalorder %s3185_s24, 2 }
 0xe4e   : > { %s3715_s25 = sld [smem:[#allocation17_spill]] }
 0xe53   : > { %s2286_s15 = sand.u32 1, %s3714_s26  }
 0xe54   : > { %p3716_p9 = scmp.ne.s32.totalorder %s3715_s25, 0  ;;  %s2287_s30 = scalar_lea.sflag [#allocation4], %s2286_s15 }
 0xe56   : > { %p2739_p5 = pnand %p3717_p13, %p3716_p9 }
 0xe58   : > { %p2740_p10 = pneg %p2739_p5 }
 0xe5a   : > { %3168 = dma.done.wait (%p2740_p10), %s2287_s30, 256  }
 0xe5b   : > { %3170 = vsyncadd (%p2740_p10), %s2287_s30, 4294967040  ;;  %p27_p1 = scmp.ge.s32.totalorder %s3362_s18, 4   ;;  %s3718_s21 = smov %s3177_s22 }
 0xe5c   : > { %s3719_s22 = smov %s3181_s23  ;;  %s3720_s23 = smov %s3378_s28 }
 0xe5d   : > { %s3721_s24 = smov %s3362_s18  ;;  %29 = sbr.rel (!%p27_p1) target bundleno = 12 (0xc), region = 129 }
 0xe62   :  { %2292 = vsyncpa [#allocation3], 1 }
 0xe63   :  { %2294 = vsyncpa [#allocation3 + $0x1], 1 }
 0xe64   :  { %2295 = vsyncpa [#allocation6], 1 }
 0xe65   :  { %2296 = vsyncpa [#allocation9], 1 }
 0xe66   :  { %2297 = vsyncpa [#allocation4], 1 }
 0xe67   :  { %2299 = vsyncpa [#allocation4 + $0x1], 1 }

</bundles_post_ra>
